<compile_context>
chip_gen: v7x
topology: tpu7x:2x2x1
jax: 0.10.0
libtpu: 0.0.40
codegen_flags: <defaults>
</compile_context>

<pallas_src>
import functools

import numpy as np

import jax
import jax.numpy as jnp
from jax.experimental import pallas as pl
from jax.experimental.pallas import tpu as pltpu


def _sigmoid_eup(x):
    # sigmoid(x) == 0.5 * tanh(0.5 * x) + 0.5  -> single EUP transcendental.
    return 0.5 * jnp.tanh(0.5 * x) + 0.5


# ----------------------------------------------------------------------------
# Time-fused kernel: grid = (batch_blocks, T).  h/c resident in VMEM scratch.
# Per step: depthwise 3x3 conv on h (XLU rolls + masks), one bf16 MXU dot for the
# 1x1 mix over concat(x, h_conv), LSTM gate math in f32.
# ----------------------------------------------------------------------------
def _fused_seq_kernel(x_ref, h0_ref, c0_ref, mask_ref, wdw_ref, bdw_ref,
                      wmix_ref, bmix_ref, h_seq_ref, c_last_ref,
                      h_state, c_state, xh_scr, *, Nb, C, H, W):
    HW = H * W
    t = pl.program_id(1)
    T = pl.num_programs(1)

    @pl.when(t == 0)
    def _():
        h_state[...] = h0_ref[...]
        c_state[...] = c0_ref[...]

    # Stage x into the bf16 dot scratch first: these stores hide under the conv.
    for b in range(Nb):
        xh_scr[:C, b * HW:(b + 1) * HW] = x_ref[0, b].astype(jnp.bfloat16)

    # Depthwise 3x3 conv (padding=1, bias) on the resident hidden state.
    for b in range(Nb):
        h = h_state[b]                                 # (C, HW) f32
        acc = jnp.zeros((C, HW), jnp.float32)
        for di in (-1, 0, 1):
            for dj in (-1, 0, 1):
                tap = (di + 1) * 3 + (dj + 1)
                w_tap = wdw_ref[:, tap:tap + 1]        # (C, 1) lane-broadcast
                if di == 0 and dj == 0:
                    acc = acc + w_tap * h
                else:
                    s = di * W + dj
                    shifted = pltpu.roll(h, (-s) % HW, axis=1)
                    acc = acc + w_tap * (shifted * mask_ref[tap:tap + 1, :])
        h_conv = acc + bdw_ref[...]                    # (C, HW) f32
        xh_scr[C:, b * HW:(b + 1) * HW] = h_conv.astype(jnp.bfloat16)

    # One MXU dot: (4C, 2C) bf16 @ (2C, Nb*HW) bf16 -> f32.
    mix = jnp.dot(wmix_ref[...], xh_scr[...],
                  preferred_element_type=jnp.float32) + bmix_ref[...]

    f = _sigmoid_eup(mix[0 * C:1 * C])                 # forget gate
    i = _sigmoid_eup(mix[1 * C:2 * C])                 # input gate
    o = _sigmoid_eup(mix[2 * C:3 * C])                 # output gate
    g = jnp.tanh(mix[3 * C:4 * C])                     # cell update (dropout p=0)

    for b in range(Nb):
        sl = slice(b * HW, (b + 1) * HW)
        c_t = f[:, sl] * c_state[b] + i[:, sl] * g[:, sl]
        h_t = o[:, sl] * jnp.tanh(c_t)
        c_state[b] = c_t
        h_state[b] = h_t
        h_seq_ref[0, b] = h_t

    @pl.when(t == T - 1)
    def _():
        c_last_ref[...] = c_state[...]


# ----------------------------------------------------------------------------
# Zero-state single-step kernel: h_tm1 == 0, c_tm1 == 0.  The depthwise-conv
# bias is folded into the mix bias on the host, so only wmix[:, :C] @ x remains.
# ----------------------------------------------------------------------------
def _zero_state_kernel(x_ref, wmixx_ref, bmix_ref, h_out_ref, c_out_ref, *, C):
    x = x_ref[0].astype(jnp.bfloat16)                  # (C, HW)
    mix = jnp.dot(wmixx_ref[...], x,
                  preferred_element_type=jnp.float32) + bmix_ref[...]
    i = _sigmoid_eup(mix[1 * C:2 * C])
    o = _sigmoid_eup(mix[2 * C:3 * C])
    g = jnp.tanh(mix[3 * C:4 * C])
    c_t = i * g                                        # f * c_tm1 term is zero
    h_out_ref[0] = o * jnp.tanh(c_t)
    c_out_ref[0] = c_t


# ----------------------------------------------------------------------------
# Host-side helpers + pallas_call wrappers.
# ----------------------------------------------------------------------------
def _conv_tap_masks(H, W):
    """(9, H*W) float32 {0,1} validity mask per 3x3 tap (constant)."""
    HW = H * W
    row = np.arange(HW) // W
    col = np.arange(HW) % W
    masks = np.zeros((9, HW), np.float32)
    for di in (-1, 0, 1):
        for dj in (-1, 0, 1):
            ok = ((row + di >= 0) & (row + di < H)
                  & (col + dj >= 0) & (col + dj < W))
            masks[(di + 1) * 3 + (dj + 1)] = ok.astype(np.float32)
    return jnp.asarray(masks)


def _seq_call(x_seq3, h0, c0, masks, wdw, bdw, wmix_bf, bmix, *, Nb, C, H, W):
    T, N = x_seq3.shape[0], x_seq3.shape[1]
    G = N // Nb
    HW = H * W
    kern = functools.partial(_fused_seq_kernel, Nb=Nb, C=C, H=H, W=W)
    rep = lambda b, t: (0, 0)                          # weights resident across grid
    return pl.pallas_call(
        kern,
        out_shape=(jax.ShapeDtypeStruct((T, N, C, HW), jnp.float32),
                   jax.ShapeDtypeStruct((N, C, HW), jnp.float32)),
        grid_spec=pltpu.PrefetchScalarGridSpec(
            num_scalar_prefetch=0,
            grid=(G, T),                               # time innermost (carried)
            in_specs=[
                pl.BlockSpec((1, Nb, C, HW), lambda b, t: (t, b, 0, 0)),  # x_seq
                pl.BlockSpec((Nb, C, HW), lambda b, t: (b, 0, 0)),        # h0
                pl.BlockSpec((Nb, C, HW), lambda b, t: (b, 0, 0)),        # c0
                pl.BlockSpec((9, HW), rep),                               # conv masks
                pl.BlockSpec((C, 9), rep),                                # dw weights
                pl.BlockSpec((C, 1), rep),                                # dw bias
                pl.BlockSpec((4 * C, 2 * C), rep),                        # mix W (bf16)
                pl.BlockSpec((4 * C, 1), rep),                            # mix bias
            ],
            out_specs=[
                pl.BlockSpec((1, Nb, C, HW), lambda b, t: (t, b, 0, 0)),  # h sequence
                pl.BlockSpec((Nb, C, HW), lambda b, t: (b, 0, 0)),        # final c
            ],
            scratch_shapes=[
                pltpu.VMEM((Nb, C, HW), jnp.float32),          # resident h state
                pltpu.VMEM((Nb, C, HW), jnp.float32),          # resident c state
                pltpu.VMEM((2 * C, Nb * HW), jnp.bfloat16),    # concat(x, h_conv)
            ],
        ),
        compiler_params=pltpu.CompilerParams(
            dimension_semantics=("parallel", "arbitrary")),
        input_output_aliases={2: 1},                   # donate c_prev -> c_last
    )(x_seq3, h0, c0, masks, wdw, bdw, wmix_bf, bmix)


def _zero_state_call(x3, wmix_x_bf, bmix_eff, *, C, H, W):
    N = x3.shape[0]
    HW = H * W
    kern = functools.partial(_zero_state_kernel, C=C)
    rep = lambda n: (0, 0)
    blk = lambda n: (n, 0, 0)
    return pl.pallas_call(
        kern,
        out_shape=(jax.ShapeDtypeStruct((N, C, HW), jnp.float32),
                   jax.ShapeDtypeStruct((N, C, HW), jnp.float32)),
        grid_spec=pltpu.PrefetchScalarGridSpec(
            num_scalar_prefetch=0,
            grid=(N,),
            in_specs=[
                pl.BlockSpec((1, C, HW), blk),         # x
                pl.BlockSpec((4 * C, C), rep),         # mix W (x half only, bf16)
                pl.BlockSpec((4 * C, 1), rep),         # folded bias
            ],
            out_specs=[
                pl.BlockSpec((1, C, HW), blk),
                pl.BlockSpec((1, C, HW), blk),
            ],
        ),
        compiler_params=pltpu.CompilerParams(dimension_semantics=("parallel",)),
    )(x3, wmix_x_bf, bmix_eff)


def _prep_params(params, C):
    w_dw, b_dw, w_mix, b_mix = params
    wdw2 = w_dw.reshape(C, 9).astype(jnp.float32)
    bdw2 = b_dw.reshape(C, 1).astype(jnp.float32)
    wmix_bf = w_mix.astype(jnp.bfloat16)               # MXU operand in bf16
    bmix2 = b_mix.reshape(4 * C, 1).astype(jnp.float32)
    return wdw2, bdw2, wmix_bf, bmix2


# ----------------------------------------------------------------------------
# Time-fused multi-step forward (addresses the old TODO).
#   x_seq: (T, N, C, H, W)  ->  (h_seq (T,N,C,H,W), (h_T, c_T))
# ----------------------------------------------------------------------------
def rnn_detector_stage_forward_sequence(x_seq_nchw, params, h_and_c_previous=None):
    T, N, C, H, W = x_seq_nchw.shape
    HW = H * W
    assert C % 8 == 0 and HW % 128 == 0                # lane/sublane alignment

    x_seq3 = x_seq_nchw.reshape(T, N, C, HW).astype(jnp.float32)
    if h_and_c_previous is None:
        h0 = jnp.zeros((N, C, HW), jnp.float32)
        c0 = jnp.zeros((N, C, HW), jnp.float32)
    else:
        h_tm1, c_tm1 = h_and_c_previous
        h0 = h_tm1.reshape(N, C, HW).astype(jnp.float32)
        c0 = c_tm1.reshape(N, C, HW).astype(jnp.float32)

    # Keep 2 parallel batch blocks when possible so both v7x TensorCores get work;
    # each block processes Nb elements per step (wider MXU stream as N grows).
    Nb = N // 2 if (N % 2 == 0 and N >= 2) else N

    wdw2, bdw2, wmix_bf, bmix2 = _prep_params(params, C)
    masks = _conv_tap_masks(H, W)
    h_seq, c_last = _seq_call(x_seq3, h0, c0, masks, wdw2, bdw2, wmix_bf, bmix2,
                              Nb=Nb, C=C, H=H, W=W)
    h_seq4 = h_seq.reshape(T, N, C, H, W)
    h_T = h_seq4[-1]
    c_T = c_last.reshape(N, C, H, W)
    return h_seq4, (h_T, c_T)


# ----------------------------------------------------------------------------
# Single-step forward: identical interface/semantics to the torch module.
# ----------------------------------------------------------------------------
def rnn_detector_stage_forward(x_nchw, params, h_and_c_previous=None):
    """x_nchw: (N, C, H, W). params = (w_dw (C,3,3), b_dw (C,), w_mix (4C,2C), b_mix (4C,)).
    Returns (h_t, (h_t, c_t)) in NCHW."""
    w_dw, b_dw, w_mix, b_mix = params
    N, C, H, W = x_nchw.shape
    HW = H * W
    assert C % 8 == 0 and HW % 128 == 0

    if h_and_c_previous is None:
        # Specialized path: conv(h=0) == conv bias -> fold it into the mix bias.
        x3 = x_nchw.reshape(N, C, HW).astype(jnp.float32)
        wmix_x = w_mix[:, :C].astype(jnp.bfloat16)
        bmix_eff = (b_mix.astype(jnp.float32)
                    + w_mix[:, C:].astype(jnp.float32) @ b_dw.astype(jnp.float32)
                    ).reshape(4 * C, 1)
        h_flat, c_flat = _zero_state_call(x3, wmix_x, bmix_eff, C=C, H=H, W=W)
        h_t = h_flat.reshape(N, C, H, W)
        c_t = c_flat.reshape(N, C, H, W)
        return h_t, (h_t, c_t)

    # General path = T=1 instance of the time-fused kernel.
    _, (h_t, c_t) = rnn_detector_stage_forward_sequence(
        x_nchw[None], params, h_and_c_previous)
    return h_t, (h_t, c_t)


# ----------------------------------------------------------------------------
# Pure-JAX reference (independent path via lax conv) for correctness check.
# ----------------------------------------------------------------------------
def ref_forward(x_nchw, params, h_and_c_previous=None):
    w_dw, b_dw, w_mix, b_mix = params
    N, C, H, W = x_nchw.shape
    if h_and_c_previous is None:
        h_tm1 = jnp.zeros_like(x_nchw)
        c_tm1 = jnp.zeros_like(x_nchw)
    else:
        h_tm1, c_tm1 = h_and_c_previous

    w_oihw = w_dw[:, None, :, :]                       # (C,1,3,3) torch layout
    h_conv = jax.lax.conv_general_dilated(
        h_tm1, w_oihw, window_strides=(1, 1), padding="SAME",
        feature_group_count=C,
        dimension_numbers=("NCHW", "OIHW", "NCHW")) + b_dw[None, :, None, None]

    xh = jnp.concatenate([x_nchw, h_conv], axis=1)     # (N, 2C, H, W)
    mix = jnp.einsum("oi,nihw->nohw", w_mix, xh) + b_mix[None, :, None, None]

    f = jax.nn.sigmoid(mix[:, 0 * C:1 * C])
    i = jax.nn.sigmoid(mix[:, 1 * C:2 * C])
    o = jax.nn.sigmoid(mix[:, 2 * C:3 * C])
    g = jnp.tanh(mix[:, 3 * C:4 * C])
    c_t = f * c_tm1 + i * g
    h_t = o * jnp.tanh(c_t)
    return h_t, (h_t, c_t)


if __name__ == "__main__":
    # Shapes consistent with the module: stage_dim (channels) = 32, 16x16 spatial.
    N, C, H, W, T = 2, 32, 16, 16, 8

    key = jax.random.PRNGKey(0)
    kx, kh, kc, k1, k2, k3, k4, kseq = jax.random.split(key, 8)

    x = jax.random.normal(kx, (N, C, H, W), jnp.float32)
    h0 = jax.random.normal(kh, (N, C, H, W), jnp.float32) * 0.5
    c0 = jax.random.normal(kc, (N, C, H, W), jnp.float32) * 0.5

    # Synthetic params, torch layouts (squeezed): depthwise (C,1,3,3)->(C,3,3),
    # bias (C,); 1x1 conv (4C,2C,1,1)->(4C,2C), bias (4C,).
    w_dw = jax.random.normal(k1, (C, 3, 3), jnp.float32) * 0.1
    b_dw = jax.random.normal(k2, (C,), jnp.float32) * 0.1
    w_mix = jax.random.normal(k3, (4 * C, 2 * C), jnp.float32) * 0.05
    b_mix = jax.random.normal(k4, (4 * C,), jnp.float32) * 0.1
    params = (w_dw, b_dw, w_mix, b_mix)

    fwd = jax.jit(rnn_detector_stage_forward)
    fwd_seq = jax.jit(rnn_detector_stage_forward_sequence)

    # bf16 MXU operands -> compare against the f32 reference at relaxed tolerance.
    ATOL_STEP, ATOL_SEQ, RTOL = 2e-2, 5e-2, 1e-2

    # 1) Single step with explicit previous state (fused conv + mix + gates).
    h_t, (h_same, c_t) = fwd(x, params, (h0, c0))
    jax.block_until_ready((h_t, c_t))
    h_ref, (_, c_ref) = ref_forward(x, params, (h0, c0))
    assert jnp.allclose(h_t, h_ref, atol=ATOL_STEP, rtol=RTOL), \
        float(jnp.max(jnp.abs(h_t - h_ref)))
    assert jnp.allclose(c_t, c_ref, atol=ATOL_STEP, rtol=RTOL), \
        float(jnp.max(jnp.abs(c_t - c_ref)))

    # 2) Zero-state path (specialized kernel with folded conv bias).
    h_t0, (_, c_t0) = fwd(x, params, None)
    jax.block_until_ready((h_t0, c_t0))
    h_ref0, (_, c_ref0) = ref_forward(x, params, None)
    assert jnp.allclose(h_t0, h_ref0, atol=ATOL_STEP, rtol=RTOL), \
        float(jnp.max(jnp.abs(h_t0 - h_ref0)))
    assert jnp.allclose(c_t0, c_ref0, atol=ATOL_STEP, rtol=RTOL), \
        float(jnp.max(jnp.abs(c_t0 - c_ref0)))

    # 3) Time-fused sequence (one pallas_call, h/c resident in VMEM) vs. stepwise ref.
    x_seq = jax.random.normal(kseq, (T, N, C, H, W), jnp.float32)
    h_seq, (h_T, c_T) = fwd_seq(x_seq, params, (h0, c0))
    jax.block_until_ready((h_seq, c_T))
    hr, cr = h0, c0
    h_seq_ref = []
    for tt in range(T):
        hr, (_, cr) = ref_forward(x_seq[tt], params, (hr, cr))
        h_seq_ref.append(hr)
    h_seq_ref = jnp.stack(h_seq_ref)
    assert jnp.allclose(h_seq, h_seq_ref, atol=ATOL_SEQ, rtol=RTOL), \
        float(jnp.max(jnp.abs(h_seq - h_seq_ref)))
    assert jnp.allclose(h_T, h_seq_ref[-1], atol=ATOL_SEQ, rtol=RTOL)
    assert jnp.allclose(c_T, cr, atol=ATOL_SEQ, rtol=RTOL), \
        float(jnp.max(jnp.abs(c_T - cr)))

    print("KERNEL_OK")
</pallas_src>

<mosaic_0001>
module attributes {stable_mosaic.version = 11 : i64} {
  func.func @_fused_seq_kernel(%arg0: i32, %arg1: i32, %arg2: memref<1x1x32x256xf32, #tpu.memory_space<vmem>>, %arg3: memref<1x32x256xf32, #tpu.memory_space<vmem>>, %arg4: memref<1x32x256xf32, #tpu.memory_space<vmem>>, %arg5: memref<9x256xf32, #tpu.memory_space<vmem>>, %arg6: memref<32x9xf32, #tpu.memory_space<vmem>>, %arg7: memref<32x1xf32, #tpu.memory_space<vmem>>, %arg8: memref<128x64xbf16, #tpu.memory_space<vmem>>, %arg9: memref<128x1xf32, #tpu.memory_space<vmem>>, %arg10: memref<1x1x32x256xf32, #tpu.memory_space<vmem>>, %arg11: memref<1x32x256xf32, #tpu.memory_space<vmem>>, %arg12: memref<1x32x256xf32, #tpu.memory_space<vmem>>, %arg13: memref<1x32x256xf32, #tpu.memory_space<vmem>>, %arg14: memref<64x256xbf16, #tpu.memory_space<vmem>>) attributes {dimension_semantics = [#tpu.dimension_semantics<parallel>, #tpu.dimension_semantics<arbitrary>], iteration_bounds = array<i64: 2, 1>, scalar_prefetch = 0 : i64, scratch_operands = 3 : i64, tpu.core_type = #tpu.core_type<tc>, window_params = [{transform_indices = @transform_0, window_bounds = array<i64: 1, 1, 32, 256>}, {transform_indices = @transform_1, window_bounds = array<i64: 1, 32, 256>}, {transform_indices = @transform_2, window_bounds = array<i64: 1, 32, 256>}, {pipeline_mode = #tpu.pipeline_mode<synchronous>, transform_indices = @transform_3, window_bounds = array<i64: 9, 256>}, {pipeline_mode = #tpu.pipeline_mode<synchronous>, transform_indices = @transform_4, window_bounds = array<i64: 32, 9>}, {pipeline_mode = #tpu.pipeline_mode<synchronous>, transform_indices = @transform_5, window_bounds = array<i64: 32, 1>}, {pipeline_mode = #tpu.pipeline_mode<synchronous>, transform_indices = @transform_6, window_bounds = array<i64: 128, 64>}, {pipeline_mode = #tpu.pipeline_mode<synchronous>, transform_indices = @transform_7, window_bounds = array<i64: 128, 1>}, {transform_indices = @transform_8, window_bounds = array<i64: 1, 1, 32, 256>}, {transform_indices = @transform_9, window_bounds = array<i64: 1, 32, 256>}]} {
    %c0_i32 = arith.constant 0 : i32
    %0 = arith.cmpi eq, %arg1, %c0_i32 : i32
    %1 = arith.extui %0 : i1 to i32
    %c0_i32_0 = arith.constant 0 : i32
    %2 = arith.cmpi ne, %1, %c0_i32_0 : i32
    scf.if %2 {
      %c0_69 = arith.constant 0 : index
      %c0_70 = arith.constant 0 : index
      %c0_71 = arith.constant 0 : index
      %134 = vector.load %arg3[%c0_69, %c0_70, %c0_71] : memref<1x32x256xf32, #tpu.memory_space<vmem>>, vector<1x32x256xf32>
      %c0_72 = arith.constant 0 : index
      %c0_73 = arith.constant 0 : index
      %c0_74 = arith.constant 0 : index
      %135 = vector.load %arg12[%c0_72, %c0_73, %c0_74] : memref<1x32x256xf32, #tpu.memory_space<vmem>>, vector<1x32x256xf32>
      tpu.vector_store %arg12[%c0_72, %c0_73, %c0_74], %134 {strides = array<i32>} : memref<1x32x256xf32, #tpu.memory_space<vmem>>, vector<1x32x256xf32>,
      %c0_75 = arith.constant 0 : index
      %c0_76 = arith.constant 0 : index
      %c0_77 = arith.constant 0 : index
      %136 = vector.load %arg4[%c0_75, %c0_76, %c0_77] : memref<1x32x256xf32, #tpu.memory_space<vmem>>, vector<1x32x256xf32>
      %c0_78 = arith.constant 0 : index
      %c0_79 = arith.constant 0 : index
      %c0_80 = arith.constant 0 : index
      %137 = vector.load %arg13[%c0_78, %c0_79, %c0_80] : memref<1x32x256xf32, #tpu.memory_space<vmem>>, vector<1x32x256xf32>
      tpu.vector_store %arg13[%c0_78, %c0_79, %c0_80], %136 {strides = array<i32>} : memref<1x32x256xf32, #tpu.memory_space<vmem>>, vector<1x32x256xf32>,
    } else {
    }
    %c0 = arith.constant 0 : index
    %c0_1 = arith.constant 0 : index
    %c0_2 = arith.constant 0 : index
    %c0_3 = arith.constant 0 : index
    %3 = vector.load %arg2[%c0, %c0_1, %c0_2, %c0_3] : memref<1x1x32x256xf32, #tpu.memory_space<vmem>>, vector<1x1x32x256xf32>
    %4 = vector.shape_cast %3 : vector<1x1x32x256xf32> to vector<32x256xf32>
    %5 = arith.truncf %4 : vector<32x256xf32> to vector<32x256xbf16>
    %c0_4 = arith.constant 0 : index
    %c0_5 = arith.constant 0 : index
    %6 = vector.load %arg14[%c0_4, %c0_5] : memref<64x256xbf16, #tpu.memory_space<vmem>>, vector<32x256xbf16>
    tpu.vector_store %arg14[%c0_4, %c0_5], %5 {strides = array<i32>} : memref<64x256xbf16, #tpu.memory_space<vmem>>, vector<32x256xbf16>,
    %c0_6 = arith.constant 0 : index
    %c0_7 = arith.constant 0 : index
    %c0_8 = arith.constant 0 : index
    %7 = vector.load %arg12[%c0_6, %c0_7, %c0_8] : memref<1x32x256xf32, #tpu.memory_space<vmem>>, vector<1x32x256xf32>
    %8 = vector.shape_cast %7 : vector<1x32x256xf32> to vector<32x256xf32>
    %cst = arith.constant 0.000000e+00 : f32
    %9 = vector.broadcast %cst : f32 to vector<32x256xf32>
    %c0_9 = arith.constant 0 : index
    %c0_10 = arith.constant 0 : index
    %10 = vector.load %arg6[%c0_9, %c0_10] : memref<32x9xf32, #tpu.memory_space<vmem>>, vector<32x1xf32>
    %c17_i32 = arith.constant 17 : i32
    %11 = tpu.dynamic_rotate %8 by %c17_i32 dim 1 : vector<32x256xf32>, i32 -> vector<32x256xf32>
    %c0_11 = arith.constant 0 : index
    %c0_12 = arith.constant 0 : index
    %12 = vector.load %arg5[%c0_11, %c0_12] : memref<9x256xf32, #tpu.memory_space<vmem>>, vector<1x256xf32>
    %13 = vector.broadcast %12 : vector<1x256xf32> to vector<32x256xf32>
    %14 = arith.mulf %11, %13 : vector<32x256xf32>
    %15 = vector.broadcast %10 : vector<32x1xf32> to vector<32x256xf32>
    %16 = arith.mulf %15, %14 : vector<32x256xf32>
    %17 = arith.addf %9, %16 : vector<32x256xf32>
    %c0_13 = arith.constant 0 : index
    %c1 = arith.constant 1 : index
    %18 = vector.load %arg6[%c0_13, %c1] : memref<32x9xf32, #tpu.memory_space<vmem>>, vector<32x1xf32>
    %c16_i32 = arith.constant 16 : i32
    %19 = tpu.dynamic_rotate %8 by %c16_i32 dim 1 : vector<32x256xf32>, i32 -> vector<32x256xf32>
    %c1_14 = arith.constant 1 : index
    %c0_15 = arith.constant 0 : index
    %20 = vector.load %arg5[%c1_14, %c0_15] : memref<9x256xf32, #tpu.memory_space<vmem>>, vector<1x256xf32>
    %21 = vector.broadcast %20 : vector<1x256xf32> to vector<32x256xf32>
    %22 = arith.mulf %19, %21 : vector<32x256xf32>
    %23 = vector.broadcast %18 : vector<32x1xf32> to vector<32x256xf32>
    %24 = arith.mulf %23, %22 : vector<32x256xf32>
    %25 = arith.addf %17, %24 : vector<32x256xf32>
    %c0_16 = arith.constant 0 : index
    %c2 = arith.constant 2 : index
    %26 = vector.load %arg6[%c0_16, %c2] : memref<32x9xf32, #tpu.memory_space<vmem>>, vector<32x1xf32>
    %c15_i32 = arith.constant 15 : i32
    %27 = tpu.dynamic_rotate %8 by %c15_i32 dim 1 : vector<32x256xf32>, i32 -> vector<32x256xf32>
    %c2_17 = arith.constant 2 : index
    %c0_18 = arith.constant 0 : index
    %28 = vector.load %arg5[%c2_17, %c0_18] : memref<9x256xf32, #tpu.memory_space<vmem>>, vector<1x256xf32>
    %29 = vector.broadcast %28 : vector<1x256xf32> to vector<32x256xf32>
    %30 = arith.mulf %27, %29 : vector<32x256xf32>
    %31 = vector.broadcast %26 : vector<32x1xf32> to vector<32x256xf32>
    %32 = arith.mulf %31, %30 : vector<32x256xf32>
    %33 = arith.addf %25, %32 : vector<32x256xf32>
    %c0_19 = arith.constant 0 : index
    %c3 = arith.constant 3 : index
    %34 = vector.load %arg6[%c0_19, %c3] : memref<32x9xf32, #tpu.memory_space<vmem>>, vector<32x1xf32>
    %c1_i32 = arith.constant 1 : i32
    %35 = tpu.dynamic_rotate %8 by %c1_i32 dim 1 : vector<32x256xf32>, i32 -> vector<32x256xf32>
    %c3_20 = arith.constant 3 : index
    %c0_21 = arith.constant 0 : index
    %36 = vector.load %arg5[%c3_20, %c0_21] : memref<9x256xf32, #tpu.memory_space<vmem>>, vector<1x256xf32>
    %37 = vector.broadcast %36 : vector<1x256xf32> to vector<32x256xf32>
    %38 = arith.mulf %35, %37 : vector<32x256xf32>
    %39 = vector.broadcast %34 : vector<32x1xf32> to vector<32x256xf32>
    %40 = arith.mulf %39, %38 : vector<32x256xf32>
    %41 = arith.addf %33, %40 : vector<32x256xf32>
    %c0_22 = arith.constant 0 : index
    %c4 = arith.constant 4 : index
    %42 = vector.load %arg6[%c0_22, %c4] : memref<32x9xf32, #tpu.memory_space<vmem>>, vector<32x1xf32>
    %43 = vector.broadcast %42 : vector<32x1xf32> to vector<32x256xf32>
    %44 = arith.mulf %43, %8 : vector<32x256xf32>
    %45 = arith.addf %41, %44 : vector<32x256xf32>
    %c0_23 = arith.constant 0 : index
    %c5 = arith.constant 5 : index
    %46 = vector.load %arg6[%c0_23, %c5] : memref<32x9xf32, #tpu.memory_space<vmem>>, vector<32x1xf32>
    %c255_i32 = arith.constant 255 : i32
    %47 = tpu.dynamic_rotate %8 by %c255_i32 dim 1 : vector<32x256xf32>, i32 -> vector<32x256xf32>
    %c5_24 = arith.constant 5 : index
    %c0_25 = arith.constant 0 : index
    %48 = vector.load %arg5[%c5_24, %c0_25] : memref<9x256xf32, #tpu.memory_space<vmem>>, vector<1x256xf32>
    %49 = vector.broadcast %48 : vector<1x256xf32> to vector<32x256xf32>
    %50 = arith.mulf %47, %49 : vector<32x256xf32>
    %51 = vector.broadcast %46 : vector<32x1xf32> to vector<32x256xf32>
    %52 = arith.mulf %51, %50 : vector<32x256xf32>
    %53 = arith.addf %45, %52 : vector<32x256xf32>
    %c0_26 = arith.constant 0 : index
    %c6 = arith.constant 6 : index
    %54 = vector.load %arg6[%c0_26, %c6] : memref<32x9xf32, #tpu.memory_space<vmem>>, vector<32x1xf32>
    %c241_i32 = arith.constant 241 : i32
    %55 = tpu.dynamic_rotate %8 by %c241_i32 dim 1 : vector<32x256xf32>, i32 -> vector<32x256xf32>
    %c6_27 = arith.constant 6 : index
    %c0_28 = arith.constant 0 : index
    %56 = vector.load %arg5[%c6_27, %c0_28] : memref<9x256xf32, #tpu.memory_space<vmem>>, vector<1x256xf32>
    %57 = vector.broadcast %56 : vector<1x256xf32> to vector<32x256xf32>
    %58 = arith.mulf %55, %57 : vector<32x256xf32>
    %59 = vector.broadcast %54 : vector<32x1xf32> to vector<32x256xf32>
    %60 = arith.mulf %59, %58 : vector<32x256xf32>
    %61 = arith.addf %53, %60 : vector<32x256xf32>
    %c0_29 = arith.constant 0 : index
    %c7 = arith.constant 7 : index
    %62 = vector.load %arg6[%c0_29, %c7] : memref<32x9xf32, #tpu.memory_space<vmem>>, vector<32x1xf32>
    %c240_i32 = arith.constant 240 : i32
    %63 = tpu.dynamic_rotate %8 by %c240_i32 dim 1 : vector<32x256xf32>, i32 -> vector<32x256xf32>
    %c7_30 = arith.constant 7 : index
    %c0_31 = arith.constant 0 : index
    %64 = vector.load %arg5[%c7_30, %c0_31] : memref<9x256xf32, #tpu.memory_space<vmem>>, vector<1x256xf32>
    %65 = vector.broadcast %64 : vector<1x256xf32> to vector<32x256xf32>
    %66 = arith.mulf %63, %65 : vector<32x256xf32>
    %67 = vector.broadcast %62 : vector<32x1xf32> to vector<32x256xf32>
    %68 = arith.mulf %67, %66 : vector<32x256xf32>
    %69 = arith.addf %61, %68 : vector<32x256xf32>
    %c0_32 = arith.constant 0 : index
    %c8 = arith.constant 8 : index
    %70 = vector.load %arg6[%c0_32, %c8] : memref<32x9xf32, #tpu.memory_space<vmem>>, vector<32x1xf32>
    %c239_i32 = arith.constant 239 : i32
    %71 = tpu.dynamic_rotate %8 by %c239_i32 dim 1 : vector<32x256xf32>, i32 -> vector<32x256xf32>
    %c8_33 = arith.constant 8 : index
    %c0_34 = arith.constant 0 : index
    %72 = vector.load %arg5[%c8_33, %c0_34] : memref<9x256xf32, #tpu.memory_space<vmem>>, vector<1x256xf32>
    %73 = vector.broadcast %72 : vector<1x256xf32> to vector<32x256xf32>
    %74 = arith.mulf %71, %73 : vector<32x256xf32>
    %75 = vector.broadcast %70 : vector<32x1xf32> to vector<32x256xf32>
    %76 = arith.mulf %75, %74 : vector<32x256xf32>
    %77 = arith.addf %69, %76 : vector<32x256xf32>
    %c0_35 = arith.constant 0 : index
    %c0_36 = arith.constant 0 : index
    %78 = vector.load %arg7[%c0_35, %c0_36] : memref<32x1xf32, #tpu.memory_space<vmem>>, vector<32x1xf32>
    %79 = vector.broadcast %78 : vector<32x1xf32> to vector<32x256xf32>
    %80 = arith.addf %77, %79 : vector<32x256xf32>
    %81 = arith.truncf %80 : vector<32x256xf32> to vector<32x256xbf16>
    %c32 = arith.constant 32 : index
    %c0_37 = arith.constant 0 : index
    %82 = vector.load %arg14[%c32, %c0_37] : memref<64x256xbf16, #tpu.memory_space<vmem>>, vector<32x256xbf16>
    tpu.vector_store %arg14[%c32, %c0_37], %81 {strides = array<i32>} : memref<64x256xbf16, #tpu.memory_space<vmem>>, vector<32x256xbf16>,
    %c0_38 = arith.constant 0 : index
    %c0_39 = arith.constant 0 : index
    %83 = vector.load %arg8[%c0_38, %c0_39] : memref<128x64xbf16, #tpu.memory_space<vmem>>, vector<128x64xbf16>
    %c0_40 = arith.constant 0 : index
    %c0_41 = arith.constant 0 : index
    %84 = vector.load %arg14[%c0_40, %c0_41] : memref<64x256xbf16, #tpu.memory_space<vmem>>, vector<64x256xbf16>
    %cst_42 = arith.constant dense<0.000000e+00> : vector<128x256xf32>
    %85 = tpu.matmul %83, %84, %cst_42 {dimension_numbers = #tpu.dot_dimension_numbers<[1], [0], [0], [1], [0, 0, 1, 1], [], []>} : vector<128x64xbf16>, vector<64x256xbf16>, vector<128x256xf32> -> vector<128x256xf32>
    %c0_43 = arith.constant 0 : index
    %c0_44 = arith.constant 0 : index
    %86 = vector.load %arg9[%c0_43, %c0_44] : memref<128x1xf32, #tpu.memory_space<vmem>>, vector<128x1xf32>
    %87 = vector.broadcast %86 : vector<128x1xf32> to vector<128x256xf32>
    %88 = arith.addf %85, %87 : vector<128x256xf32>
    %89 = vector.extract_strided_slice %88 {offsets = [0, 0], sizes = [32, 256], strides = [1, 1]} : vector<128x256xf32> to vector<32x256xf32>
    %cst_45 = arith.constant 5.000000e-01 : f32
    %90 = vector.broadcast %cst_45 : f32 to vector<32x256xf32>
    %91 = arith.mulf %90, %89 : vector<32x256xf32>
    %92 = math.tanh %91 : vector<32x256xf32>
    %cst_46 = arith.constant 5.000000e-01 : f32
    %93 = vector.broadcast %cst_46 : f32 to vector<32x256xf32>
    %94 = arith.mulf %93, %92 : vector<32x256xf32>
    %cst_47 = arith.constant 5.000000e-01 : f32
    %95 = vector.broadcast %cst_47 : f32 to vector<32x256xf32>
    %96 = arith.addf %94, %95 : vector<32x256xf32>
    %97 = vector.extract_strided_slice %88 {offsets = [32, 0], sizes = [32, 256], strides = [1, 1]} : vector<128x256xf32> to vector<32x256xf32>
    %cst_48 = arith.constant 5.000000e-01 : f32
    %98 = vector.broadcast %cst_48 : f32 to vector<32x256xf32>
    %99 = arith.mulf %98, %97 : vector<32x256xf32>
    %100 = math.tanh %99 : vector<32x256xf32>
    %cst_49 = arith.constant 5.000000e-01 : f32
    %101 = vector.broadcast %cst_49 : f32 to vector<32x256xf32>
    %102 = arith.mulf %101, %100 : vector<32x256xf32>
    %cst_50 = arith.constant 5.000000e-01 : f32
    %103 = vector.broadcast %cst_50 : f32 to vector<32x256xf32>
    %104 = arith.addf %102, %103 : vector<32x256xf32>
    %105 = vector.extract_strided_slice %88 {offsets = [64, 0], sizes = [32, 256], strides = [1, 1]} : vector<128x256xf32> to vector<32x256xf32>
    %cst_51 = arith.constant 5.000000e-01 : f32
    %106 = vector.broadcast %cst_51 : f32 to vector<32x256xf32>
    %107 = arith.mulf %106, %105 : vector<32x256xf32>
    %108 = math.tanh %107 : vector<32x256xf32>
    %cst_52 = arith.constant 5.000000e-01 : f32
    %109 = vector.broadcast %cst_52 : f32 to vector<32x256xf32>
    %110 = arith.mulf %109, %108 : vector<32x256xf32>
    %cst_53 = arith.constant 5.000000e-01 : f32
    %111 = vector.broadcast %cst_53 : f32 to vector<32x256xf32>
    %112 = arith.addf %110, %111 : vector<32x256xf32>
    %113 = vector.extract_strided_slice %88 {offsets = [96, 0], sizes = [32, 256], strides = [1, 1]} : vector<128x256xf32> to vector<32x256xf32>
    %114 = math.tanh %113 : vector<32x256xf32>
    %c0_54 = arith.constant 0 : index
    %c0_55 = arith.constant 0 : index
    %c0_56 = arith.constant 0 : index
    %115 = vector.load %arg13[%c0_54, %c0_55, %c0_56] : memref<1x32x256xf32, #tpu.memory_space<vmem>>, vector<1x32x256xf32>
    %116 = vector.shape_cast %115 : vector<1x32x256xf32> to vector<32x256xf32>
    %117 = arith.mulf %96, %116 : vector<32x256xf32>
    %118 = arith.mulf %104, %114 : vector<32x256xf32>
    %119 = arith.addf %117, %118 : vector<32x256xf32>
    %120 = math.tanh %119 : vector<32x256xf32>
    %121 = arith.mulf %112, %120 : vector<32x256xf32>
    %c0_57 = arith.constant 0 : index
    %c0_58 = arith.constant 0 : index
    %c0_59 = arith.constant 0 : index
    %122 = vector.load %arg13[%c0_57, %c0_58, %c0_59] : memref<1x32x256xf32, #tpu.memory_space<vmem>>, vector<1x32x256xf32>
    %123 = vector.shape_cast %122 : vector<1x32x256xf32> to vector<32x256xf32>
    %124 = vector.shape_cast %119 : vector<32x256xf32> to vector<1x32x256xf32>
    tpu.vector_store %arg13[%c0_57, %c0_58, %c0_59], %124 {strides = array<i32>} : memref<1x32x256xf32, #tpu.memory_space<vmem>>, vector<1x32x256xf32>,
    %c0_60 = arith.constant 0 : index
    %c0_61 = arith.constant 0 : index
    %c0_62 = arith.constant 0 : index
    %125 = vector.load %arg12[%c0_60, %c0_61, %c0_62] : memref<1x32x256xf32, #tpu.memory_space<vmem>>, vector<1x32x256xf32>
    %126 = vector.shape_cast %125 : vector<1x32x256xf32> to vector<32x256xf32>
    %127 = vector.shape_cast %121 : vector<32x256xf32> to vector<1x32x256xf32>
    tpu.vector_store %arg12[%c0_60, %c0_61, %c0_62], %127 {strides = array<i32>} : memref<1x32x256xf32, #tpu.memory_space<vmem>>, vector<1x32x256xf32>,
    %c0_63 = arith.constant 0 : index
    %c0_64 = arith.constant 0 : index
    %c0_65 = arith.constant 0 : index
    %c0_66 = arith.constant 0 : index
    %128 = vector.load %arg10[%c0_63, %c0_64, %c0_65, %c0_66] : memref<1x1x32x256xf32, #tpu.memory_space<vmem>>, vector<1x1x32x256xf32>
    %129 = vector.shape_cast %128 : vector<1x1x32x256xf32> to vector<32x256xf32>
    %130 = vector.shape_cast %121 : vector<32x256xf32> to vector<1x1x32x256xf32>
    tpu.vector_store %arg10[%c0_63, %c0_64, %c0_65, %c0_66], %130 {strides = array<i32>} : memref<1x1x32x256xf32, #tpu.memory_space<vmem>>, vector<1x1x32x256xf32>,
    %c0_i32_67 = arith.constant 0 : i32
    %131 = arith.cmpi eq, %arg1, %c0_i32_67 : i32
    %132 = arith.extui %131 : i1 to i32
    %c0_i32_68 = arith.constant 0 : i32
    %133 = arith.cmpi ne, %132, %c0_i32_68 : i32
    scf.if %133 {
      %c0_69 = arith.constant 0 : index
      %c0_70 = arith.constant 0 : index
      %c0_71 = arith.constant 0 : index
      %134 = vector.load %arg13[%c0_69, %c0_70, %c0_71] : memref<1x32x256xf32, #tpu.memory_space<vmem>>, vector<1x32x256xf32>
      %c0_72 = arith.constant 0 : index
      %c0_73 = arith.constant 0 : index
      %c0_74 = arith.constant 0 : index
      %135 = vector.load %arg11[%c0_72, %c0_73, %c0_74] : memref<1x32x256xf32, #tpu.memory_space<vmem>>, vector<1x32x256xf32>
      tpu.vector_store %arg11[%c0_72, %c0_73, %c0_74], %134 {strides = array<i32>} : memref<1x32x256xf32, #tpu.memory_space<vmem>>, vector<1x32x256xf32>,
    } else {
    }
    return
  }
  func.func @transform_0(%arg0: i32, %arg1: i32) -> (i32, i32, i32, i32) {
    %c0_i32 = arith.constant 0 : i32
    %c0_i32_0 = arith.constant 0 : i32
    %c0_i32_1 = arith.constant 0 : i32
    return %arg1, %arg0, %c0_i32, %c0_i32_0 : i32, i32, i32, i32
  }
  func.func @transform_1(%arg0: i32, %arg1: i32) -> (i32, i32, i32) {
    %c0_i32 = arith.constant 0 : i32
    %c0_i32_0 = arith.constant 0 : i32
    %c0_i32_1 = arith.constant 0 : i32
    return %arg0, %c0_i32, %c0_i32_0 : i32, i32, i32
  }
  func.func @transform_2(%arg0: i32, %arg1: i32) -> (i32, i32, i32) {
    %c0_i32 = arith.constant 0 : i32
    %c0_i32_0 = arith.constant 0 : i32
    %c0_i32_1 = arith.constant 0 : i32
    return %arg0, %c0_i32, %c0_i32_0 : i32, i32, i32
  }
  func.func @transform_3(%arg0: i32, %arg1: i32) -> (i32, i32) {
    %c0_i32 = arith.constant 0 : i32
    %c0_i32_0 = arith.constant 0 : i32
    %c0_i32_1 = arith.constant 0 : i32
    return %c0_i32, %c0_i32_0 : i32, i32
  }
  func.func @transform_4(%arg0: i32, %arg1: i32) -> (i32, i32) {
    %c0_i32 = arith.constant 0 : i32
    %c0_i32_0 = arith.constant 0 : i32
    %c0_i32_1 = arith.constant 0 : i32
    return %c0_i32, %c0_i32_0 : i32, i32
  }
  func.func @transform_5(%arg0: i32, %arg1: i32) -> (i32, i32) {
    %c0_i32 = arith.constant 0 : i32
    %c0_i32_0 = arith.constant 0 : i32
    %c0_i32_1 = arith.constant 0 : i32
    return %c0_i32, %c0_i32_0 : i32, i32
  }
  func.func @transform_6(%arg0: i32, %arg1: i32) -> (i32, i32) {
    %c0_i32 = arith.constant 0 : i32
    %c0_i32_0 = arith.constant 0 : i32
    %c0_i32_1 = arith.constant 0 : i32
    return %c0_i32, %c0_i32_0 : i32, i32
  }
  func.func @transform_7(%arg0: i32, %arg1: i32) -> (i32, i32) {
    %c0_i32 = arith.constant 0 : i32
    %c0_i32_0 = arith.constant 0 : i32
    %c0_i32_1 = arith.constant 0 : i32
    return %c0_i32, %c0_i32_0 : i32, i32
  }
  func.func @transform_8(%arg0: i32, %arg1: i32) -> (i32, i32, i32, i32) {
    %c0_i32 = arith.constant 0 : i32
    %c0_i32_0 = arith.constant 0 : i32
    %c0_i32_1 = arith.constant 0 : i32
    return %arg1, %arg0, %c0_i32, %c0_i32_0 : i32, i32, i32, i32
  }
  func.func @transform_9(%arg0: i32, %arg1: i32) -> (i32, i32, i32) {
    %c0_i32 = arith.constant 0 : i32
    %c0_i32_0 = arith.constant 0 : i32
    %c0_i32_1 = arith.constant 0 : i32
    return %arg0, %c0_i32, %c0_i32_0 : i32, i32, i32
  }
}

</mosaic_0001>

<bundles_post_ra>
// kernel: rnn_detector_stage_forward.1
= control target key start
LH: loop header
LB: loop body
LE: loop exit
PB: predicated region body
PF: predicated region fallthrough
CT: control target
= control target key end

     0   :  { %s2130_s30 = smov 0   ;;  %s2132_s10 = smov 0   ;;  %s3183_s0 = inlined_call_operand.vmem [shape: f32[1,2,32,256], index: 0, kind: input, shape index: {}]   ;;  %s3184_s1 = inlined_call_operand.vmem [shape: f32[2,32,256], index: 1, kind: input, shape index: {}]   ;;  %s3185_s2 = inlined_call_operand.vmem [shape: f32[2,32,256], index: 2, kind: input, shape index: {}, may-alias: {2,9}]   ;;  %s3186_s3 = inlined_call_operand.vmem [shape: f32[9,256], index: 3, kind: input, shape index: {}]   ;;  %s3187_s4 = inlined_call_operand.vmem [shape: f32[32,9], index: 4, kind: input, shape index: {}]   ;;  %s3188_s5 = inlined_call_operand.vmem [shape: f32[32,1], index: 5, kind: input, shape index: {}]   ;;  %s3189_s6 = inlined_call_operand.vmem [shape: bf16[128,64], index: 6, kind: input, shape index: {}]   ;;  %s3190_s7 = inlined_call_operand.vmem [shape: f32[128,1], index: 7, kind: input, shape index: {}]   ;;  %s3191_s8 = inlined_call_operand.vmem [shape: f32[1,2,32,256], index: 8, kind: output, shape index: {0}]   ;;  %s3192_s9 = inlined_call_operand.vmem [shape: f32[2,32,256], index: 9, kind: output, shape index: {1}, may-alias: {2,9}]  }
   0x1   :  { %s2134_s11 = smov 0  }
   0x2 LB: > { %s32_s12 = sadd.s32 1, %s2057_s10  ;;  %p1834_p0 = scmp.ge.s32.totalorder %s2061_s11, 1  ;;  %s2061_s11 = sphi %s2134_s11, %s20_s11   ;;  %s2057_s10 = sphi %s2132_s10, %s3274_s10   ;;  %s2053_s30 = sphi %s2130_s30, %s3273_s30  }
   0x3   : > { %p34_p1 = scmp.ge.s32.totalorder %s32_s12, 2  ;;  %p330_p2 = scmp.lt.s32.totalorder %s2061_s11, 3 }
   0x5   : > { %s3276_s12 = smov (%p34_p1, %s32_s12), 0  ;;  %p331_p3 = pnand %p1834_p0, %p330_p2 }
   0x7   : > { %334 = sbr.rel (%p331_p3) target bundleno = 684 (0x2ac), region = 52 }
   0xe   : > { %v2151_v0 = vld [vmem:[%s3187_s4] sm:$0xff]  ;;  %p391_p4 = scmp.lt.s32.totalorder %s2053_s30, 1  ;;  %v2063_v1 = vmov 1   ;;  %v3193_v2 = vmov 0   ;;  %v2158_v3 = vld [vmem:[%s3187_s4 + $0x8] sm:$0xff]  ;;  %s2065_s21 = smov 17   ;;  %v503_v37 = vlaneseq }
   0xf   : > { %1924 = vset.pattern.permute.xlu1 %v2063_v1  ;;  %1927 = vset.pattern.permute.xlu0 %v2063_v1  ;;  %v2066_v6 = vmov 2   ;;  %s2067_s22 = smov 16   ;;  %v2194_v9 = vld [vmem:[%s3187_s4 + $0x10] sm:$0xff]  ;;  %s2068_s25 = smov 15   ;;  %v2069_v10 = vmov 3   ;;  %v2214_v11 = vld [vmem:[%s3187_s4 + $0x18] sm:$0xff] }
  0x10   : > { %617 = vperm.xlu1 %1924, %v2151_v0   ;;  %s3278_s30 = smov (!%p391_p4, %s2053_s30), 1  ;;  %1405 = vmatprep.mubr.bf16.mxu0 %v3193_v2  ;;  %s2070_s28 = smov 1   ;;  %v2071_v14 = vmov 4   ;;  %v2072_v17 = vmov 5   ;;  %v2074_v18 = vmov 6   ;;  %v2076_v19 = vmov 7  }
  0x11   : > { %1445 = vmatprep.mubr.bf16.mxu1 %v3193_v2  ;;  %s2161_s17 = sshll.u32 %s3278_s30, 6  ;;  %s2073_s29 = smov 127   ;;  %v2078_v23 = vmov 8   ;;  %v517_v40 = vshrl.u32 %v503_v37, 7  ;;  %v2369_v43 = vand.u32 127, %v503_v37  ;;  %vm1348_vm8 = vcmask 523264  }
  0x12   : > { %s2167_s20 = scalar_lea.vmem %s3184_s1, %s2161_s17  ;;  %s2075_s30 = smov 113   ;;  %v1846_v42 = vld [vmem:[%s3186_s3 + $0x2] ss:$8 sm:$0x3] }
  0x13   : > { %v2171_v4 = vld [vmem:[%s2167_s20 + $0x10] sm:$0xff]  ;;  %v2176_v5 = vld [vmem:[%s2167_s20 + $0x18] sm:$0xff]  ;;  %v2182_v7 = vld [vmem:[%s2167_s20 + $0x8] sm:$0xff]  ;;  %s2077_s13 = smov 112   ;;  %s2079_s14 = smov 111   ;;  %v2371_v44 = vsub.s32 0, %v517_v40 }
  0x14   : > { %621 = vperm.xlu1 %1924, %v2158_v3   ;;  %3217 = vst [vmem:[#allocation5_spill] sm:$0xff] %v2171_v4  ;;  %489 = vrot.lane.b32.xlu0 %v2171_v4, %s2065_s21  ;;  %3218 = vst [vmem:[#allocation6_spill] sm:$0xff] %v2176_v5  ;;  %v2185_v8 = vld [vmem:[%s2167_s20] sm:$0xff]  ;;  %v2218_v12 = vld [vmem:[%s2167_s20 + $0x28] sm:$0xff]  ;;  %v2373_v45 = vsub.s32 1, %v517_v40  ;;  %vm664_vm0 = vcmp.lt.s32.totalorder %v2369_v43, 15  ;;  %s2552_s19 = scalar_lea.vmem %s3183_s0, %s2161_s17  ;;  %s3097_s27 = scalar_lea.vmem %s3185_s2, %s2161_s17 }
  0x15   : > { %v2224_v13 = vld [vmem:[%s2167_s20 + $0x20] sm:$0xff]  ;;  %v2250_v15 = vld [vmem:[%s2167_s20 + $0x30] sm:$0xff]  ;;  %v2256_v16 = vld [vmem:[%s2167_s20 + $0x38] sm:$0xff]  ;;  %3222 = vst [vmem:[#allocation10_spill] sm:$0xff] %v2371_v44  ;;  %v2386_v49 = vrot.slane %v1846_v42, %v2371_v44  ;;  %vm586_vm1 = vcmp.lt.s32.totalorder %v2369_v43, 16  ;;  %vm742_vm2 = vcmp.lt.s32.totalorder %v2369_v43, 1  ;;  %s3126_s15 = scalar_lea.vmem %s3192_s9, %s2161_s17 }
  0x16   : > { %3219 = vst [vmem:[#allocation7_spill] sm:$0xff] %v2250_v15  ;;  %3220 = vst [vmem:[#allocation8_spill] sm:$0xff] %v2256_v16  ;;  %v1845_v48 = vld [vmem:[%s3186_s3 + $0x1] ss:$8 sm:$0x3]  ;;  %v2389_v50 = vrot.slane %v1846_v42, %v2373_v45  ;;  %v1215_v42 = vld [vmem:[%s3190_s7 + $0x18] sm:$0xff] }
  0x17   : > { %3223 = vst [vmem:[#allocation11_spill] sm:$0xff] %v2373_v45  ;;  %v2395_v52 = vrot.slane %v1845_v48, %v2371_v44  ;;  %v2398_v53 = vrot.slane %v1845_v48, %v2373_v45  ;;  %vm505_vm3 = vcmp.lt.s32.totalorder %v2369_v43, 17  ;;  %vm852_vm4 = vcmp.lt.s32.totalorder %v2369_v43, 127 }
  0x18   : > { %1925 = vset.pattern.permute.xlu1 %v2066_v6  ;;  %497 = vrot.lane.b32.xlu0 %v2176_v5, %s2065_s21  ;;  %vm1008_vm5 = vcmp.lt.s32.totalorder %v2369_v43, 112  ;;  %vm930_vm6 = vcmp.lt.s32.totalorder %v2369_v43, 113  ;;  %vm1086_vm7 = vcmp.lt.s32.totalorder %v2369_v43, 111 }
  0x19   : > { %699 = vperm.xlu1 %1925, %v2158_v3  }
  0x1c   : > { %578 = vrot.lane.b32.xlu0 %v2182_v7, %s2067_s22 }
  0x1d   : > { %487 = vrot.lane.b32.xlu1 %v2185_v8, %s2065_s21 }
  0x1e   : > { %1926 = vset.pattern.permute.xlu1 %v3193_v2 }
  0x20   : > { %625 = vperm.xlu0 %1927, %v2194_v9  }
  0x21   : > { %495 = vrot.lane.b32.xlu1 %v2182_v7, %s2065_s21 }
  0x24   : > { %1928 = vset.pattern.permute.xlu0 %v2066_v6 }
  0x25   : > { %546 = vperm.xlu1 %1926, %v2194_v9   ;;  %695 = vperm.xlu0 %1928, %v2151_v0  }
  0x29   : > { %570 = vrot.lane.b32.xlu1 %v2185_v8, %s2067_s22  ;;  %656 = vrot.lane.b32.xlu0 %v2182_v7, %s2068_s25 }
  0x2a   : > { %1929 = vset.pattern.permute.xlu1 %v2063_v1 }
  0x2d   : > { %572 = vrot.lane.b32.xlu1 %v2171_v4, %s2067_s22  ;;  %703 = vperm.xlu0 %1928, %v2194_v9  }
  0x31   : > { %580 = vrot.lane.b32.xlu1 %v2176_v5, %s2067_s22  ;;  %1931 = vset.pattern.permute.xlu0 %v2069_v10 }
  0x32   : > { %777 = vperm.xlu0 %1931, %v2158_v3  }
  0x35   : > { %629 = vperm.xlu1 %1929, %v2214_v11  }
  0x36   : > { %499 = vrot.lane.b32.xlu0 %v2218_v12, %s2065_s21 }
  0x39   : > { %1930 = vset.pattern.permute.xlu1 %v2069_v10 }
  0x3a   : > { %773 = vperm.xlu1 %1930, %v2151_v0   ;;  %574 = vrot.lane.b32.xlu0 %v2224_v13, %s2067_s22 }
  0x3e   : > { %648 = vrot.lane.b32.xlu1 %v2185_v8, %s2068_s25  ;;  %582 = vrot.lane.b32.xlu0 %v2218_v12, %s2067_s22 }
  0x3f   : > { %1932 = vset.pattern.permute.xlu1 %v2066_v6 }
  0x42   : > { %650 = vrot.lane.b32.xlu1 %v2171_v4, %s2068_s25  ;;  %726 = vrot.lane.b32.xlu0 %v2185_v8, %s2070_s28 }
  0x46   : > { %658 = vrot.lane.b32.xlu1 %v2176_v5, %s2068_s25  ;;  %734 = vrot.lane.b32.xlu0 %v2182_v7, %s2070_s28 }
  0x4a   : > { %707 = vperm.xlu1 %1932, %v2214_v11   ;;  %781 = vperm.xlu0 %1931, %v2194_v9  }
  0x4e   : > { %1933 = vset.pattern.permute.xlu1 %v2071_v14  ;;  %1934 = vset.pattern.permute.xlu0 %v2071_v14 }
  0x4f   : > { %805 = vperm.xlu1 %1933, %v2151_v0   ;;  %809 = vperm.xlu0 %1934, %v2158_v3  }
  0x53   : > { %491 = vrot.lane.b32.xlu1 %v2224_v13, %s2065_s21  ;;  %660 = vrot.lane.b32.xlu0 %v2218_v12, %s2068_s25 }
  0x54   : > { %1935 = vset.pattern.permute.xlu1 %v2069_v10 }
  0x57   : > { %493 = vrot.lane.b32.xlu1 %v2250_v15, %s2065_s21  ;;  %813 = vperm.xlu0 %1934, %v2194_v9  }
  0x5b   : > { %501 = vrot.lane.b32.xlu1 %v2256_v16, %s2065_s21  ;;  %1937 = vset.pattern.permute.xlu0 %v2072_v17 }
  0x5c   : > { %887 = vperm.xlu0 %1937, %v2158_v3  }
  0x5f   : > { %576 = vrot.lane.b32.xlu1 %v2250_v15, %s2067_s22 }
  0x60   : > { %738 = vrot.lane.b32.xlu0 %v2218_v12, %s2070_s28 }
  0x63   : > { %584 = vrot.lane.b32.xlu1 %v2256_v16, %s2067_s22 }
  0x64   : > { %836 = vrot.lane.b32.xlu0 %v2185_v8, %s2073_s29 }
  0x67   : > { %728 = vrot.lane.b32.xlu1 %v2171_v4, %s2070_s28 }
  0x68   : > { %844 = vrot.lane.b32.xlu0 %v2182_v7, %s2073_s29 }
  0x6b   : > { %736 = vrot.lane.b32.xlu1 %v2176_v5, %s2070_s28 }
  0x6c   : > { %891 = vperm.xlu0 %1937, %v2194_v9  }
  0x6f   : > { %785 = vperm.xlu1 %1935, %v2214_v11  }
  0x70   : > { %1940 = vset.pattern.permute.xlu0 %v2074_v18 }
  0x71   : > { %965 = vperm.xlu0 %1940, %v2158_v3  }
  0x73   : > { %1936 = vset.pattern.permute.xlu1 %v2072_v17 }
  0x74   : > { %883 = vperm.xlu1 %1936, %v2151_v0  }
  0x75   : > { %922 = vrot.lane.b32.xlu0 %v2182_v7, %s2075_s30 }
  0x78   : > { %652 = vrot.lane.b32.xlu1 %v2224_v13, %s2068_s25 }
  0x79   : > { %1938 = vset.pattern.permute.xlu1 %v2071_v14  ;;  %969 = vperm.xlu0 %1940, %v2194_v9  }
  0x7c   : > { %654 = vrot.lane.b32.xlu1 %v2250_v15, %s2068_s25 }
  0x7d   : > { %1943 = vset.pattern.permute.xlu0 %v2076_v19 }
  0x7e   : > { %1043 = vperm.xlu0 %1943, %v2158_v3  }
  0x80   : > { %662 = vrot.lane.b32.xlu1 %v2256_v16, %s2068_s25 }
  0x82   : > { %848 = vrot.lane.b32.xlu0 %v2218_v12, %s2073_s29 }
  0x84   : > { %817 = vperm.xlu1 %1938, %v2214_v11  }
  0x86   : > { %992 = vrot.lane.b32.xlu0 %v2185_v8, %s2077_s13  ;;  %v2300_v20 = vpop.permute.xlu0 %489 }
  0x88   : > { %1939 = vset.pattern.permute.xlu1 %v2074_v18 }
  0x89   : > { %961 = vperm.xlu1 %1939, %v2151_v0  }
  0x8a   : > { %1000 = vrot.lane.b32.xlu0 %v2182_v7, %s2077_s13  ;;  %v2311_v24 = vpop.permute.xlu0 %497 }
  0x8d   : > { %730 = vrot.lane.b32.xlu1 %v2224_v13, %s2070_s28 }
  0x8e   : > { %1941 = vset.pattern.permute.xlu1 %v2072_v17  ;;  %1047 = vperm.xlu0 %1943, %v2194_v9   ;;  %v2321_v26 = vpop.permute.xlu0 %578 }
  0x8f   : > { %v2302_v21 = vpop.permute.xlu1 %617 }
  0x91   : > { %732 = vrot.lane.b32.xlu1 %v2250_v15, %s2070_s28 }
  0x92   : > { %1946 = vset.pattern.permute.xlu0 %v2078_v23 }
  0x93   : > { %v2307_v22 = vpop.permute.xlu1 %621  ;;  %1121 = vperm.xlu0 %1946, %v2158_v3  }
  0x95   : > { %740 = vrot.lane.b32.xlu1 %v2256_v16, %s2070_s28 }
  0x97   : > { %920 = vrot.lane.b32.xlu0 %v2250_v15, %s2075_s30 }
  0x98   : > { %v2315_v25 = vpop.permute.xlu1 %699 }
  0x99   : > { %838 = vrot.lane.b32.xlu1 %v2171_v4, %s2073_s29 }
  0x9b   : > { %928 = vrot.lane.b32.xlu0 %v2256_v16, %s2075_s30 }
  0x9c   : > { %v2325_v27 = vpop.permute.xlu1 %487 }
  0x9d   : > { %846 = vrot.lane.b32.xlu1 %v2176_v5, %s2073_s29 }
  0x9f   : > { %1072 = vrot.lane.b32.xlu0 %v2171_v4, %s2079_s14  ;;  %v626_v29 = vpop.permute.xlu0 %625 }
  0xa0   : > { %v2331_v28 = vpop.permute.xlu1 %495 }
  0xa1   : > { %895 = vperm.xlu1 %1941, %v2214_v11  }
  0xa3   : > { %1080 = vrot.lane.b32.xlu0 %v2176_v5, %s2079_s14 }
  0xa4   : > { %v2336_v30 = vpop.permute.xlu1 %546  ;;  %v696_v31 = vpop.permute.xlu0 %695 }
  0xa5   : > { %1942 = vset.pattern.permute.xlu1 %v2076_v19 }
  0xa6   : > { %1039 = vperm.xlu1 %1942, %v2151_v0  }
  0xa7   : > { %1129 = vperm.xlu0 %1946, %v2214_v11  }
  0xa8   : > { %v2341_v32 = vpop.permute.xlu1 %570  ;;  %v657_v33 = vpop.permute.xlu0 %656 }
  0xaa   : > { %914 = vrot.lane.b32.xlu1 %v2185_v8, %s2075_s30 }
  0xab   : > { %1944 = vset.pattern.permute.xlu1 %v2074_v18  ;;  %1949 = vset.pattern.permute.xlu0 %v3193_v2  ;;  %v1150_v18 = vld [vmem:[%s3188_s5 + $0x10] sm:$0xff] }
  0xac   : > { %v2346_v34 = vpop.permute.xlu1 %572  ;;  %536 = vperm.xlu0 %1949, %v2151_v0   ;;  %v2349_v35 = vpop.permute.xlu0 %703 }
  0xae   : > { %916 = vrot.lane.b32.xlu1 %v2171_v4, %s2075_s30 }
  0xb0   : > { %v2353_v36 = vpop.permute.xlu1 %580  ;;  %541 = vperm.xlu0 %1949, %v2158_v3  }
  0xb1   : > { %v2356_v38 = vpop.permute.xlu0 %777 }
  0xb2   : > { %924 = vrot.lane.b32.xlu1 %v2176_v5, %s2075_s30 }
  0xb4   : > { %v2360_v39 = vpop.permute.xlu1 %629  ;;  %551 = vperm.xlu0 %1949, %v2214_v11  }
  0xb5   : > { %3221 = vst [vmem:[#allocation9_spill] sm:$0xff] %v2360_v39  ;;  %v2363_v41 = vpop.permute.xlu0 %499  ;;  %v3230_v39 = vmov 0  }
  0xb6   : > { %973 = vperm.xlu1 %1944, %v2214_v11  }
  0xb8   : > { %996 = vrot.lane.b32.xlu0 %v2224_v13, %s2077_s13 }
  0xb9   : > { %v2377_v46 = vpop.permute.xlu1 %773  ;;  %v575_v47 = vpop.permute.xlu0 %574 }
  0xba   : > { %1945 = vset.pattern.permute.xlu1 %v2078_v23 }
  0xbb   : > { %1117 = vperm.xlu1 %1945, %v2151_v0  }
  0xbc   : > { %1004 = vrot.lane.b32.xlu0 %v2218_v12, %s2077_s13 }
  0xbd   : > { %v649_v51 = vpop.permute.xlu1 %648  ;;  %v583_v56 = vpop.permute.xlu0 %582 }
  0xbe   : > { %v665_v54 = vsel %vm664_vm0, %v649_v51, %v657_v33  ;;  %v669_v55 = vsel %vm664_vm0, %v657_v33, %v649_v51  ;;  %v589_v59 = vsel %vm586_vm1, %v575_v47, %v583_v56  ;;  %v593_v60 = vsel %vm586_vm1, %v583_v56, %v575_v47  ;;  %v1213_v33 = vld [vmem:[%s3190_s7 + $0x8] sm:$0xff] }
  0xbf   : > { %v686_v57 = vmul.f32 %v2386_v49, %v669_v55  ;;  %v687_v58 = vmul.f32 %v2389_v50, %v665_v54  ;;  %840 = vrot.lane.b32.xlu1 %v2224_v13, %s2073_s29  ;;  %v612_v61 = vmul.f32 %v2395_v52, %v593_v60  ;;  %v613_v62 = vmul.f32 %v2398_v53, %v589_v59  ;;  %v514_v47 = vld [vmem:[%s3186_s3] ss:$8 sm:$0x3] }
  0xc0   : > { %1947 = vset.pattern.permute.xlu1 %v2076_v19  ;;  %1074 = vrot.lane.b32.xlu0 %v2224_v13, %s2079_s14  ;;  %v2466_v51 = vrot.slane %v514_v47, %v2371_v44  ;;  %v2469_v54 = vrot.slane %v514_v47, %v2373_v45  ;;  %v1217_v56 = vld [vmem:[%s3190_s7 + $0x28] sm:$0xff] }
  0xc1   : > { %v2415_v63 = vmul.f32 %v696_v31, %v686_v57  ;;  %v2417_v0 = vmul.f32 %v696_v31, %v687_v58  ;;  %v2421_v1 = vpop.permute.xlu1 %650  ;;  %v636_v3 = vmul.f32 %v626_v29, %v612_v61  ;;  %v637_v6 = vmul.f32 %v626_v29, %v613_v62  ;;  %v727_v10 = vpop.permute.xlu0 %726 }
  0xc3   : > { %3224 = vst [vmem:[#allocation12_spill] sm:$0xff] %v2415_v63  ;;  %3225 = vst [vmem:[#allocation13_spill] sm:$0xff] %v2417_v0  ;;  %842 = vrot.lane.b32.xlu1 %v2250_v15, %s2073_s29  ;;  %v459_v63 = vld [vmem:[%s2552_s19] sm:$0xff] }
  0xc4   : > { %1082 = vrot.lane.b32.xlu0 %v2218_v12, %s2079_s14 }
  0xc5   : > { %v2428_v14 = vpop.permute.xlu1 %658  ;;  %v735_v17 = vpop.permute.xlu0 %734 }
  0xc6   : > { %v2435_v19 = vsel %vm742_vm2, %v727_v10, %v735_v17  ;;  %v2439_v29 = vsel %vm742_vm2, %v735_v17, %v727_v10 }
  0xc7   : > { %850 = vrot.lane.b32.xlu1 %v2256_v16, %s2073_s29 }
  0xc8   : > { %1164 = vperm.xlu0 %1949, %v1150_v18   ;;  %v1219_v18 = vld [vmem:[%s3190_s7 + $0x38] sm:$0xff] }
  0xc9   : > { %v2443_v31 = vpop.permute.xlu1 %707  ;;  %v2448_v37 = vpop.permute.xlu0 %781 }
  0xca   : > { %3226 = vst [vmem:[#allocation14_spill] sm:$0xff] %v2443_v31 }
  0xcb   : > { %994 = vrot.lane.b32.xlu1 %v2171_v4, %s2077_s13 }
  0xcc   : > { %1235 = vperm.xlu0 %1949, %v1213_v33  }
  0xce   : > { %v2452_v40 = vpop.permute.xlu1 %805  ;;  %v2462_v48 = vpop.permute.xlu0 %809 }
  0xcf   : > { %1002 = vrot.lane.b32.xlu1 %v2176_v5, %s2077_s13  ;;  %3227 = vst [vmem:[#allocation15_spill] sm:$0xff] %v2462_v48 }
  0xd0   : > { %1245 = vperm.xlu0 %1949, %v1215_v42  }
  0xd2   : > { %v492_v55 = vpop.permute.xlu1 %491  ;;  %v2481_v59 = vpop.permute.xlu0 %660 }
  0xd3   : > { %v508_v57 = vsel %vm505_vm3, %v492_v55, %v2363_v41  ;;  %v512_v58 = vsel %vm505_vm3, %v2363_v41, %v492_v55  ;;  %1051 = vperm.xlu1 %1947, %v2214_v11  }
  0xd4   : > { %v530_v60 = vmul.f32 %v2466_v51, %v512_v58  ;;  %v531_v61 = vmul.f32 %v2469_v54, %v508_v57  ;;  %1255 = vperm.xlu0 %1949, %v1217_v56   ;;  %v1221_v56 = vld [vmem:[%s3190_s7 + $0x48] sm:$0xff] }
  0xd6   : > { %v558_v62 = vmul.f32 %v2336_v30, %v530_v60  ;;  %v559_v10 = vmul.f32 %v2336_v30, %v531_v61  ;;  %v2487_v17 = vpop.permute.xlu1 %493  ;;  %v2494_v11 = vpop.permute.xlu0 %813  ;;  %v1225_v30 = vld [vmem:[%s3190_s7 + $0x68] sm:$0xff] }
  0xd7   : > { %918 = vrot.lane.b32.xlu1 %v2224_v13, %s2075_s30 }
  0xd8   : > { %v2496_v41 = vadd.f32 %v636_v3, %v558_v62  ;;  %v2498_v33 = vadd.f32 %v637_v6, %v559_v10  ;;  %1948 = vset.pattern.permute.xlu1 %v2078_v23  ;;  %1265 = vperm.xlu0 %1949, %v1219_v18   ;;  %v1227_v3 = vld [vmem:[%s3190_s7 + $0x78] sm:$0xff]  ;;  %v1847_v10 = vld [vmem:[%s3186_s3 + $0x3] ss:$8 sm:$0x3] }
  0xd9   : > { %v1223_v62 = vld [vmem:[%s3190_s7 + $0x58] sm:$0xff]  ;;  %v1848_v18 = vld [vmem:[%s3186_s3 + $0x5] ss:$8 sm:$0x3] }
  0xda   : > { %v2501_v42 = vpop.permute.xlu1 %501  ;;  %v2575_v48 = vrot.slane %v1848_v18, %v2373_v45 }
  0xdb   : > { %926 = vrot.lane.b32.xlu1 %v2218_v12, %s2075_s30  ;;  %v2508_v47 = vpop.permute.xlu0 %887 }
  0xdc   : > { %1295 = vperm.xlu0 %1949, %v1225_v30  }
  0xde   : > { %v577_v55 = vpop.permute.xlu1 %576 }
  0xdf   : > { %1070 = vrot.lane.b32.xlu1 %v2185_v8, %s2079_s14  ;;  %v2515_v23 = vpop.permute.xlu0 %738 }
  0xe0   : > { %1305 = vperm.xlu0 %1949, %v1227_v3  }
  0xe2   : > { %v585_v6 = vpop.permute.xlu1 %584 }
  0xe3   : > { %v2522_v57 = vsel %vm586_vm1, %v577_v55, %v585_v6  ;;  %v2526_v58 = vsel %vm586_vm1, %v585_v6, %v577_v55  ;;  %1078 = vrot.lane.b32.xlu1 %v2182_v7, %s2079_s14  ;;  %v837_v60 = vpop.permute.xlu0 %836  ;;  %v1148_v6 = vld [vmem:[%s3188_s5] sm:$0xff] }
  0xe4   : > { %3228 = vst [vmem:[#allocation16_spill] sm:$0xff] %v2522_v57  ;;  %3229 = vst [vmem:[#allocation17_spill] sm:$0xff] %v2526_v58  ;;  %1275 = vperm.xlu0 %1949, %v1221_v56   ;;  %v2558_v56 = vrot.slane %v1847_v10, %v2373_v45  ;;  %v2568_v57 = vrot.slane %v1848_v18, %v2371_v44  ;;  %v461_v58 = vld [vmem:[%s2552_s19 + $0x10] sm:$0xff]  ;;  %v464_v18 = vld [vmem:[%s2552_s19 + $0x28] sm:$0xff] }
  0xe6   : > { %v729_v61 = vpop.permute.xlu1 %728 }
  0xe7   : > { %1125 = vperm.xlu1 %1948, %v2194_v9   ;;  %v845_v30 = vpop.permute.xlu0 %844  ;;  %v2555_v9 = vrot.slane %v1847_v10, %v2371_v44 }
  0xe8   : > { %1285 = vperm.xlu0 %1949, %v1223_v62   ;;  %v853_v55 = vsel %vm852_vm4, %v837_v60, %v845_v30  ;;  %v857_v3 = vsel %vm852_vm4, %v845_v30, %v837_v60  ;;  %v460_v62 = vld [vmem:[%s2552_s19 + $0x8] sm:$0xff]  ;;  %v462_v30 = vld [vmem:[%s2552_s19 + $0x18] sm:$0xff] }
  0xe9   : > { %v468_v0 = vpack.c.bf16 %v462_v30, %v460_v62  ;;  %v1149_v62 = vld [vmem:[%s3188_s5 + $0x8] sm:$0xff]  ;;  %v875_v4 = vmul.f32 %v2575_v48, %v857_v3 }
  0xea   : > { %v737_v60 = vpop.permute.xlu1 %736 }
  0xeb   : > { %v744_v2 = vsel %vm742_vm2, %v729_v61, %v737_v60  ;;  %v748_v31 = vsel %vm742_vm2, %v737_v60, %v729_v61  ;;  %1950 = vset.pattern.permute.xlu1 %v3230_v39  ;;  %v2577_v61 = vpop.permute.xlu0 %891  ;;  %v467_v60 = vpack.c.bf16 %v461_v58, %v459_v63  ;;  %1373 = vmatprep.subr.bf16.mxu0 %v468_v0  ;;  %v463_v63 = vld [vmem:[%s2552_s19 + $0x20] sm:$0xff]  ;;  %v465_v58 = vld [vmem:[%s2552_s19 + $0x30] sm:$0xff] }
  0xec   : > { %v766_v10 = vmul.f32 %v2555_v9, %v748_v31  ;;  %v767_v5 = vmul.f32 %v2558_v56, %v744_v2  ;;  %1154 = vperm.xlu1 %1950, %v1148_v6   ;;  %3231 = vst [vmem:[#allocation18_spill] sm:$0xff] %v2577_v61  ;;  %1875 = vmatprep.subr.bf16.mxu1 %v468_v0  ;;  %v466_v6 = vld [vmem:[%s2552_s19 + $0x38] sm:$0xff]  ;;  %s3153_s19 = scalar_lea.vmem %s3191_s8, %s2161_s17 }
  0xed   : > { %1374 = vmatpush1.bf16.msra.mxu0 %v467_v60  ;;  %1879 = vmatpush1.bf16.msra.mxu1 %v467_v60  ;;  %v470_v39 = vpack.c.bf16 %v466_v6, %v464_v18  ;;  %v874_v61 = vmul.f32 %v2568_v57, %v853_v55  ;;  %v469_v0 = vpack.c.bf16 %v465_v58, %v463_v63 }
  0xee   : > { %v2583_v30 = vmul.f32 %v2356_v38, %v766_v10  ;;  %v2586_v2 = vmul.f32 %v2356_v38, %v767_v5  ;;  %v2588_v31 = vpop.permute.xlu1 %785 }
  0xef   : > { %1375 = vmatprep.subr.bf16.mxu0 %v470_v39  ;;  %1876 = vmatprep.subr.bf16.mxu1 %v470_v39 }
  0xf0   : > { %1159 = vperm.xlu1 %1950, %v1149_v62   ;;  %v2596_v10 = vpop.permute.xlu0 %965 }
  0xf1   : > { %3232 = vst [vmem:[#allocation19_spill] sm:$0xff] %v2596_v10  ;;  %1376 = vmatpush1.bf16.msra.mxu0 %v469_v0  ;;  %1880 = vmatpush1.bf16.msra.mxu1 %v469_v0 }
  0xf3   : > { %v884_v5 = vpop.permute.xlu1 %883 }
  0xf4   : > { %v2598_v38 = vmul.f32 %v884_v5, %v874_v61  ;;  %v2600_v60 = vmul.f32 %v884_v5, %v875_v4  ;;  %998 = vrot.lane.b32.xlu1 %v2250_v15, %s2077_s13  ;;  %v2604_v18 = vpop.permute.xlu0 %922 }
  0xf6   : > { %3233 = vst [vmem:[#allocation20_spill] sm:$0xff] %v2600_v60 }
  0xf7   : > { %v653_v55 = vpop.permute.xlu1 %652 }
  0xf8   : > { %v667_v3 = vsel %vm664_vm0, %v653_v55, %v2481_v59  ;;  %v671_v39 = vsel %vm664_vm0, %v2481_v59, %v653_v55  ;;  %1006 = vrot.lane.b32.xlu1 %v2256_v16, %s2077_s13  ;;  %v2616_v62 = vpop.permute.xlu0 %969 }
  0xf9   : > { %v690_v4 = vmul.f32 %v2386_v49, %v671_v39  ;;  %v691_v61 = vmul.f32 %v2389_v50, %v667_v3  ;;  %3234 = vst [vmem:[#allocation21_spill] sm:$0xff] %v2616_v62 }
  0xfb   : > { %v714_v6 = vmul.f32 %v2349_v35, %v690_v4  ;;  %v715_v63 = vmul.f32 %v2349_v35, %v691_v61  ;;  %v655_v58 = vpop.permute.xlu1 %654  ;;  %v1151_v35 = vld [vmem:[%s3188_s5 + $0x18] sm:$0xff]  ;;  %v1212_v4 = vld [vmem:[%s3190_s7] sm:$0xff] }
  0xfc   : > { %1076 = vrot.lane.b32.xlu1 %v2250_v15, %s2079_s14 }
  0xfd   : > { %v722_v0 = vadd.f32 %v714_v6, %v2496_v41  ;;  %v723_v59 = vadd.f32 %v715_v63, %v2498_v33  ;;  %v2624_v5 = vpop.permute.xlu0 %1043  ;;  %v1214_v63 = vld [vmem:[%s3190_s7 + $0x10] sm:$0xff] }
  0xfe   : > { %3235 = vst [vmem:[#allocation22_spill] sm:$0xff] %v2624_v5 }
  0xff   : > { %v663_v55 = vpop.permute.xlu1 %662 }
 0x100   : > { %v2628_v3 = vsel %vm664_vm0, %v655_v58, %v663_v55  ;;  %v2632_v39 = vsel %vm664_vm0, %v663_v55, %v655_v58  ;;  %1084 = vrot.lane.b32.xlu1 %v2256_v16, %s2079_s14 }
 0x101   : > { %v2639_v41 = vpop.permute.xlu0 %848 }
 0x102   : > { %3236 = vst [vmem:[#allocation23_spill] sm:$0xff] %v2639_v41 }
 0x103   : > { %v2641_v33 = vpop.permute.xlu1 %817 }
 0x104   : > { %3237 = vst [vmem:[#allocation24_spill] sm:$0xff] %v2641_v33  ;;  %1169 = vperm.xlu1 %1950, %v1151_v35  }
 0x105   : > { %v2646_v61 = vpop.permute.xlu0 %992 }
 0x108   : > { %1230 = vperm.xlu1 %1950, %v1212_v4   ;;  %v2648_v6 = vpop.permute.xlu1 %961  ;;  %v1216_v4 = vld [vmem:[%s3190_s7 + $0x20] sm:$0xff] }
 0x109   : > { %v2653_v58 = vpop.permute.xlu0 %1000 }
 0x10c   : > { %1240 = vperm.xlu1 %1950, %v1214_v63   ;;  %v731_v55 = vpop.permute.xlu1 %730 }
 0x10d   : > { %v745_v35 = vsel %vm742_vm2, %v731_v55, %v2515_v23  ;;  %v749_v5 = vsel %vm742_vm2, %v2515_v23, %v731_v55  ;;  %v2666_v41 = vpop.permute.xlu0 %1047  ;;  %v1218_v23 = vld [vmem:[%s3190_s7 + $0x30] sm:$0xff]  ;;  %v824_v55 = vmul.f32 %v2494_v11, %v2224_v13 }
 0x10e   : > { %v768_v10 = vmul.f32 %v2555_v9, %v749_v5  ;;  %v769_v62 = vmul.f32 %v2558_v56, %v745_v35  ;;  %3238 = vst [vmem:[#allocation25_spill] sm:$0xff] %v2666_v41  ;;  %v825_v5 = vmul.f32 %v2494_v11, %v2218_v12  ;;  %v1224_v12 = vld [vmem:[%s3190_s7 + $0x60] sm:$0xff] }
 0x110   : > { %v792_v63 = vmul.f32 %v2448_v37, %v768_v10  ;;  %v793_v16 = vmul.f32 %v2448_v37, %v769_v62  ;;  %1250 = vperm.xlu1 %1950, %v1216_v4   ;;  %v733_v33 = vpop.permute.xlu1 %732 }
 0x112   : > { %v800_v15 = vadd.f32 %v792_v63, %v722_v0  ;;  %v801_v35 = vadd.f32 %v793_v16, %v723_v59  ;;  %v2677_v60 = vpop.permute.xlu0 %1121 }
 0x113   : > { %3239 = vst [vmem:[#allocation26_spill] sm:$0xff] %v2677_v60 }
 0x114   : > { %1260 = vperm.xlu1 %1950, %v1218_v23   ;;  %v741_v10 = vpop.permute.xlu1 %740  ;;  %v2679_v41 = vadd.f32 %v824_v55, %v800_v15  ;;  %v2681_v37 = vadd.f32 %v825_v5, %v801_v35 }
 0x115   : > { %v746_v62 = vsel %vm742_vm2, %v733_v33, %v741_v10  ;;  %v750_v4 = vsel %vm742_vm2, %v741_v10, %v733_v33  ;;  %v1226_v33 = vld [vmem:[%s3190_s7 + $0x70] sm:$0xff] }
 0x116   : > { %v770_v13 = vmul.f32 %v2555_v9, %v750_v4  ;;  %v771_v16 = vmul.f32 %v2558_v56, %v746_v62  ;;  %v2692_v11 = vpop.permute.xlu0 %920 }
 0x117   : > { %3240 = vst [vmem:[#allocation27_spill] sm:$0xff] %v2692_v11  ;;  %v765_v11 = vmul.f32 %v2558_v56, %v2435_v19 }
 0x118   : > { %v2695_v15 = vmul.f32 %v2588_v31, %v770_v13  ;;  %v2698_v0 = vmul.f32 %v2588_v31, %v771_v16  ;;  %1290 = vperm.xlu1 %1950, %v1224_v12   ;;  %v839_v59 = vpop.permute.xlu1 %838  ;;  %v1220_v31 = vld [vmem:[%s3190_s7 + $0x40] sm:$0xff] }
 0x119   : > { %v1850_v16 = vld [vmem:[%s3186_s3 + $0x7] ss:$8 sm:$0x3] }
 0x11a   : > { %v2703_v63 = vpop.permute.xlu0 %928 }
 0x11c   : > { %1300 = vperm.xlu1 %1950, %v1226_v33   ;;  %v847_v23 = vpop.permute.xlu1 %846  ;;  %v591_v33 = vsel %vm586_vm1, %v2321_v26, %v2341_v32 }
 0x11d   : > { %v854_v55 = vsel %vm852_vm4, %v839_v59, %v847_v23  ;;  %v858_v5 = vsel %vm852_vm4, %v847_v23, %v839_v59  ;;  %v1222_v59 = vld [vmem:[%s3190_s7 + $0x50] sm:$0xff] }
 0x11e   : > { %v876_v35 = vmul.f32 %v2568_v57, %v854_v55  ;;  %v877_v10 = vmul.f32 %v2575_v48, %v858_v5  ;;  %v2714_v62 = vpop.permute.xlu0 %1072  ;;  %v587_v55 = vsel %vm586_vm1, %v2341_v32, %v2321_v26  ;;  %v588_v5 = vsel %vm586_vm1, %v2346_v34, %v2353_v36 }
 0x11f   : > { %3241 = vst [vmem:[#allocation28_spill] sm:$0xff] %v2714_v62  ;;  %v511_v26 = vsel %vm505_vm3, %v2311_v24, %v2300_v20  ;;  %v666_v32 = vsel %vm664_vm0, %v2421_v1, %v2428_v14  ;;  %v611_v62 = vmul.f32 %v2398_v53, %v588_v5 }
 0x120   : > { %v2717_v4 = vmul.f32 %v2508_v47, %v876_v35  ;;  %v2720_v12 = vmul.f32 %v2508_v47, %v877_v10  ;;  %1270 = vperm.xlu1 %1950, %v1220_v31   ;;  %v2722_v13 = vpop.permute.xlu1 %895  ;;  %v1849_v47 = vld [vmem:[%s3186_s3 + $0x6] ss:$8 sm:$0x3]  ;;  %v592_v31 = vsel %vm586_vm1, %v2353_v36, %v2346_v34  ;;  %v2752_v35 = vrot.slane %v1850_v16, %v2371_v44 }
 0x121   : > { %3242 = vst [vmem:[#allocation29_spill] sm:$0xff] %v2722_v13  ;;  %v507_v10 = vsel %vm505_vm3, %v2300_v20, %v2311_v24  ;;  %v670_v34 = vsel %vm664_vm0, %v2428_v14, %v2421_v1  ;;  %v608_v20 = vmul.f32 %v2395_v52, %v591_v33  ;;  %v2780_v24 = vrot.slane %v1849_v47, %v2371_v44 }
 0x122   : > { %v2737_v23 = vpop.permute.xlu0 %1080  ;;  %v510_v1 = vsel %vm505_vm3, %v2331_v28, %v2325_v27  ;;  %v609_v14 = vmul.f32 %v2398_v53, %v587_v55  ;;  %v610_v60 = vmul.f32 %v2395_v52, %v592_v31  ;;  %v688_v33 = vmul.f32 %v2386_v49, %v670_v34 }
 0x123   : > { %3243 = vst [vmem:[#allocation30_spill] sm:$0xff] %v2737_v23  ;;  %v689_v13 = vmul.f32 %v2389_v50, %v666_v32  ;;  %v764_v44 = vmul.f32 %v2555_v9, %v2439_v29  ;;  %v528_v5 = vmul.f32 %v2466_v51, %v511_v26  ;;  %v529_v31 = vmul.f32 %v2469_v54, %v507_v10 }
 0x124   : > { %1280 = vperm.xlu1 %1950, %v1222_v59   ;;  %v506_v59 = vsel %vm505_vm3, %v2325_v27, %v2331_v28  ;;  %v2798_v27 = vrot.slane %v1850_v16, %v2373_v45  ;;  %v2801_v28 = vrot.slane %v1849_v47, %v2373_v45  ;;  %v526_v29 = vmul.f32 %v2466_v51, %v510_v1 }
 0x125   : > { %v2771_v36 = vpop.permute.xlu1 %1039  ;;  %v527_v9 = vmul.f32 %v2469_v54, %v506_v59  ;;  %v632_v19 = vmul.f32 %v2302_v21, %v608_v20  ;;  %v633_v16 = vmul.f32 %v2302_v21, %v609_v14  ;;  %v634_v47 = vmul.f32 %v2307_v22, %v610_v60 }
 0x126   : > { %v2789_v23 = vpop.permute.xlu0 %1129  ;;  %v635_v26 = vmul.f32 %v2307_v22, %v611_v62  ;;  %v712_v10 = vmul.f32 %v2315_v25, %v688_v33  ;;  %v713_v34 = vmul.f32 %v2315_v25, %v689_v13  ;;  %v789_v1 = vmul.f32 %v2377_v46, %v765_v11  ;;  %v3247_v62 = vld [vmem:[#allocation6_spill] sm:$0xff] }
 0x127   : > { %3244 = vst [vmem:[#allocation31_spill] sm:$0xff] %v2789_v23  ;;  %v788_v23 = vmul.f32 %v2377_v46, %v764_v44  ;;  %v513_v59 = vsel %vm505_vm3, %v2501_v42, %v2487_v17  ;;  %v820_v22 = vmul.f32 %v2452_v40, %v2185_v8  ;;  %v821_v25 = vmul.f32 %v2452_v40, %v2182_v7  ;;  %v3245_v44 = vld [vmem:[#allocation5_spill] sm:$0xff]  ;;  %v3246_v46 = vld [vmem:[#allocation15_spill] sm:$0xff] }
 0x128   : > { %v822_v11 = vmul.f32 %v3246_v46, %v3245_v44  ;;  %v823_v13 = vmul.f32 %v3246_v46, %v3247_v62  ;;  %v509_v33 = vsel %vm505_vm3, %v2487_v17, %v2501_v42  ;;  %v1009_v40 = vsel %vm1008_vm5, %v2646_v61, %v2653_v58 }
 0x129   : > { %v915_v55 = vpop.permute.xlu1 %914  ;;  %v532_v42 = vmul.f32 %v2466_v51, %v513_v59  ;;  %v692_v46 = vmul.f32 %v2386_v49, %v2632_v39 }
 0x12a   : > { %v931_v32 = vsel %vm930_vm6, %v915_v55, %v2604_v18 }
 0x12b   : > { %v952_v56 = vmul.f32 %v2780_v24, %v931_v32  ;;  %v537_v45 = vpop.permute.xlu0 %536 }
 0x12c   : > { %v554_v20 = vmul.f32 %v537_v45, %v526_v29  ;;  %v555_v60 = vmul.f32 %v537_v45, %v527_v9  ;;  %v935_v45 = vsel %vm930_vm6, %v2604_v18, %v915_v55  ;;  %v3248_v29 = vld [vmem:[#allocation17_spill] sm:$0xff]  ;;  %v1013_v9 = vsel %vm1008_vm5, %v2653_v58, %v2646_v61 }
 0x12d   : > { %v976_v21 = vmul.f32 %v2648_v6, %v952_v56  ;;  %v2824_v14 = vpop.permute.xlu1 %916  ;;  %v614_v7 = vmul.f32 %v2395_v52, %v3248_v29  ;;  %v3249_v56 = vld [vmem:[#allocation12_spill] sm:$0xff]  ;;  %v3250_v55 = vld [vmem:[#allocation13_spill] sm:$0xff]  ;;  %v693_v61 = vmul.f32 %v2389_v50, %v2628_v3  ;;  %v953_v58 = vmul.f32 %v2801_v28, %v935_v45 }
 0x12e   : > { %v640_v32 = vadd.f32 %v632_v19, %v554_v20  ;;  %v641_v8 = vadd.f32 %v633_v16, %v555_v60  ;;  %v3251_v60 = vld [vmem:[#allocation16_spill] sm:$0xff]  ;;  %v1031_v29 = vmul.f32 %v2798_v27, %v1013_v9 }
 0x12f   : > { %v542_v17 = vpop.permute.xlu0 %541  ;;  %v615_v44 = vmul.f32 %v2398_v53, %v3251_v60  ;;  %v533_v53 = vmul.f32 %v2469_v54, %v509_v33 }
 0x130   : > { %v718_v18 = vadd.f32 %v3249_v56, %v640_v32  ;;  %v719_v19 = vadd.f32 %v3250_v55, %v641_v8  ;;  %v556_v16 = vmul.f32 %v542_v17, %v528_v5  ;;  %v557_v20 = vmul.f32 %v542_v17, %v529_v31  ;;  %v3252_v8 = vld [vmem:[#allocation9_spill] sm:$0xff] }
 0x131   : > { %v2854_v52 = vpop.permute.xlu1 %924  ;;  %v638_v5 = vmul.f32 %v3252_v8, %v614_v7  ;;  %v1030_v31 = vmul.f32 %v2752_v35, %v1009_v40  ;;  %v639_v3 = vmul.f32 %v3252_v8, %v615_v44  ;;  %v977_v7 = vmul.f32 %v2648_v6, %v953_v58  ;;  %v3255_v44 = vld [vmem:[#allocation7_spill] sm:$0xff] }
 0x132   : > { %v796_v51 = vadd.f32 %v788_v23, %v718_v18  ;;  %v797_v59 = vadd.f32 %v789_v1, %v719_v19  ;;  %v642_v62 = vadd.f32 %v634_v47, %v556_v16  ;;  %v643_v32 = vadd.f32 %v635_v26, %v557_v20  ;;  %v3253_v23 = vld [vmem:[#allocation14_spill] sm:$0xff]  ;;  %v3258_v8 = vld [vmem:[#allocation23_spill] sm:$0xff] }
 0x133   : > { %v552_v17 = vpop.permute.xlu0 %551  ;;  %v716_v1 = vmul.f32 %v3253_v23, %v692_v46  ;;  %v717_v45 = vmul.f32 %v3253_v23, %v693_v61  ;;  %v1054_v33 = vmul.f32 %v2771_v36, %v1030_v31  ;;  %v1055_v18 = vmul.f32 %v2771_v36, %v1031_v29  ;;  %v3257_v61 = vld [vmem:[#allocation8_spill] sm:$0xff] }
 0x134   : > { %v828_v56 = vadd.f32 %v820_v22, %v796_v51  ;;  %v829_v49 = vadd.f32 %v821_v25, %v797_v59  ;;  %v720_v39 = vadd.f32 %v712_v10, %v642_v62  ;;  %v721_v55 = vadd.f32 %v713_v34, %v643_v32  ;;  %v3254_v34 = vld [vmem:[#allocation20_spill] sm:$0xff] }
 0x135   : > { %v974_v50 = vpop.permute.xlu1 %973  ;;  %v560_v47 = vmul.f32 %v552_v17, %v532_v42  ;;  %v561_v26 = vmul.f32 %v552_v17, %v533_v53 }
 0x136   : > { %v798_v40 = vadd.f32 %v2583_v30, %v720_v39  ;;  %v799_v9 = vadd.f32 %v2586_v2, %v721_v55  ;;  %v906_v10 = vadd.f32 %v2598_v38, %v828_v56  ;;  %v907_v25 = vadd.f32 %v3254_v34, %v829_v49  ;;  %v3256_v2 = vld [vmem:[#allocation24_spill] sm:$0xff]  ;;  %v3260_v49 = vld [vmem:[#allocation27_spill] sm:$0xff] }
 0x137   : > { %v646_v54 = vadd.f32 %v638_v5, %v560_v47  ;;  %v647_v22 = vadd.f32 %v639_v3, %v561_v26  ;;  %v826_v46 = vmul.f32 %v3256_v2, %v3255_v44  ;;  %v827_v38 = vmul.f32 %v3256_v2, %v3257_v61 }
 0x138   : > { %v830_v42 = vadd.f32 %v822_v11, %v798_v40  ;;  %v831_v19 = vadd.f32 %v823_v13, %v799_v9  ;;  %v984_v6 = vadd.f32 %v976_v21, %v906_v10  ;;  %v985_v30 = vadd.f32 %v977_v7, %v907_v25 }
 0x139   : > { %v724_v16 = vadd.f32 %v716_v1, %v646_v54  ;;  %v725_v20 = vadd.f32 %v717_v45, %v647_v22  ;;  %v934_v39 = vsel %vm930_vm6, %v3260_v49, %v2703_v63  ;;  %v938_v55 = vsel %vm930_vm6, %v2703_v63, %v3260_v49  ;;  %v3261_v45 = vld [vmem:[#allocation29_spill] sm:$0xff] }
 0x13a   : > { %v2877_v60 = vpop.permute.xlu1 %1117  ;;  %v2884_v58 = vadd.f32 %v2717_v4, %v830_v42  ;;  %v2887_v51 = vadd.f32 %v2720_v12, %v831_v19  ;;  %v2891_v13 = vadd.f32 %v1054_v33, %v984_v6  ;;  %v2893_v21 = vadd.f32 %v1055_v18, %v985_v30  ;;  %v997_v18 = vpop.permute.xlu0 %996 }
 0x13b   : > { %v802_v36 = vadd.f32 %v2695_v15, %v724_v16  ;;  %v803_v11 = vadd.f32 %v2698_v0, %v725_v20  ;;  %v3259_v0 = vld [vmem:[#allocation18_spill] sm:$0xff]  ;;  %v932_v61 = vsel %vm930_vm6, %v2824_v14, %v2854_v52 }
 0x13d   : > { %v834_v62 = vadd.f32 %v826_v46, %v802_v36  ;;  %v835_v32 = vadd.f32 %v827_v38, %v803_v11  ;;  %v936_v38 = vsel %vm930_vm6, %v2854_v52, %v2824_v14  ;;  %v3262_v36 = vld [vmem:[#allocation21_spill] sm:$0xff]  ;;  %v1851_v14 = vld [vmem:[%s3186_s3 + $0x10] ss:$8 sm:$0x3]  ;;  %v954_v52 = vmul.f32 %v2780_v24, %v932_v61 }
 0x13e   : > { %v841_v59 = vpop.permute.xlu1 %840 }
 0x13f   : > { %v855_v5 = vsel %vm852_vm4, %v841_v59, %v3258_v8  ;;  %v859_v4 = vsel %vm852_vm4, %v3258_v8, %v841_v59 }
 0x140   : > { %v878_v12 = vmul.f32 %v2568_v57, %v855_v5  ;;  %v879_v15 = vmul.f32 %v2575_v48, %v859_v4  ;;  %v3263_v5 = vld [vmem:[#allocation25_spill] sm:$0xff] }
 0x142   : > { %v902_v31 = vmul.f32 %v3259_v0, %v878_v12  ;;  %v903_v29 = vmul.f32 %v3259_v0, %v879_v15  ;;  %v843_v17 = vpop.permute.xlu1 %842 }
 0x144   : > { %v910_v53 = vadd.f32 %v902_v31, %v2679_v41  ;;  %v911_v56 = vadd.f32 %v903_v29, %v2681_v37  ;;  %v958_v41 = vmul.f32 %v2780_v24, %v934_v39  ;;  %v959_v37 = vmul.f32 %v2801_v28, %v938_v55 }
 0x145   : > { %v955_v31 = vmul.f32 %v2801_v28, %v936_v38 }
 0x146   : > { %v851_v3 = vpop.permute.xlu1 %850  ;;  %v982_v9 = vmul.f32 %v974_v50, %v958_v41  ;;  %v983_v54 = vmul.f32 %v974_v50, %v959_v37  ;;  %v3267_v41 = vld [vmem:[#allocation28_spill] sm:$0xff] }
 0x147   : > { %v856_v23 = vsel %vm852_vm4, %v843_v17, %v851_v3  ;;  %v860_v1 = vsel %vm852_vm4, %v851_v3, %v843_v17  ;;  %v3264_v3 = vld [vmem:[#allocation10_spill] sm:$0xff] }
 0x148   : > { %v880_v47 = vmul.f32 %v2568_v57, %v856_v23  ;;  %v881_v26 = vmul.f32 %v2575_v48, %v860_v1  ;;  %v1005_v57 = vpop.permute.xlu0 %1004  ;;  %v1101_v23 = vrot.slane %v1851_v14, %v3264_v3 }
 0x149   : > { %v1011_v48 = vsel %vm1008_vm5, %v997_v18, %v1005_v57  ;;  %v1015_v16 = vsel %vm1008_vm5, %v1005_v57, %v997_v18 }
 0x14a   : > { %v904_v7 = vmul.f32 %v3261_v45, %v880_v47  ;;  %v905_v40 = vmul.f32 %v3261_v45, %v881_v26  ;;  %v995_v63 = vpop.permute.xlu1 %994  ;;  %v1034_v30 = vmul.f32 %v2752_v35, %v1011_v48  ;;  %v1035_v44 = vmul.f32 %v2798_v27, %v1015_v16  ;;  %v3268_v26 = vld [vmem:[#allocation19_spill] sm:$0xff] }
 0x14b   : > { %v978_v45 = vmul.f32 %v3268_v26, %v954_v52 }
 0x14c   : > { %v912_v22 = vadd.f32 %v904_v7, %v834_v62  ;;  %v913_v10 = vadd.f32 %v905_v40, %v835_v32  ;;  %v1058_v4 = vmul.f32 %v3263_v5, %v1034_v30  ;;  %v1059_v12 = vmul.f32 %v3263_v5, %v1035_v44  ;;  %v3269_v40 = vld [vmem:[#allocation22_spill] sm:$0xff] }
 0x14d   : > { %v979_v7 = vmul.f32 %v3268_v26, %v955_v31  ;;  %v986_v57 = vadd.f32 %v978_v45, %v2884_v58  ;;  %v3270_v30 = vld [vmem:[#allocation26_spill] sm:$0xff]  ;;  %v3271_v26 = vld [vmem:[#allocation31_spill] sm:$0xff] }
 0x14e   : > { %v1003_v34 = vpop.permute.xlu1 %1002  ;;  %v2925_v25 = vadd.f32 %v982_v9, %v912_v22  ;;  %v2927_v33 = vadd.f32 %v983_v54, %v913_v10 }
 0x14f   : > { %v1010_v32 = vsel %vm1008_vm5, %v995_v63, %v1003_v34  ;;  %v1014_v8 = vsel %vm1008_vm5, %v1003_v34, %v995_v63 }
 0x150   : > { %v1032_v29 = vmul.f32 %v2752_v35, %v1010_v32  ;;  %v1033_v17 = vmul.f32 %v2798_v27, %v1014_v8 }
 0x152   : > { %v2929_v42 = vpop.permute.xlu1 %1051  ;;  %v1056_v63 = vmul.f32 %v3269_v40, %v1032_v29  ;;  %v1057_v9 = vmul.f32 %v3269_v40, %v1033_v17 }
 0x156   : > { %v919_v19 = vpop.permute.xlu1 %918 }
 0x15a   : > { %v927_v20 = vpop.permute.xlu1 %926 }
 0x15b   : > { %v933_v50 = vsel %vm930_vm6, %v919_v19, %v927_v20  ;;  %v937_v6 = vsel %vm930_vm6, %v927_v20, %v919_v19  ;;  %v987_v19 = vadd.f32 %v979_v7, %v2887_v51  ;;  %v1064_v20 = vadd.f32 %v1056_v63, %v986_v57  ;;  %v1954_v57 = vld [vmem:[%s3189_s6 + $0x28] sm:$0xff]  }
 0x15c   : > { %v956_v2 = vmul.f32 %v2780_v24, %v933_v50  ;;  %v957_v46 = vmul.f32 %v2801_v28, %v937_v6  ;;  %v3265_v24 = vld [vmem:[#allocation11_spill] sm:$0xff]  ;;  %v3266_v28 = vld [vmem:[#allocation30_spill] sm:$0xff] }
 0x15d   : > { %v1105_v1 = vrot.slane %v1851_v14, %v3265_v24  ;;  %v1088_v37 = vsel %vm1086_vm7, %v3267_v41, %v3266_v28  ;;  %v1092_v47 = vsel %vm1086_vm7, %v3266_v28, %v3267_v41  ;;  %v1065_v50 = vadd.f32 %v1057_v9, %v987_v19  ;;  %v1955_v19 = vld [vmem:[%s3189_s6 + $0x10] sm:$0xff]  }
 0x15e   : > { %v980_v11 = vmul.f32 %v3262_v36, %v956_v2  ;;  %v981_v59 = vmul.f32 %v3262_v36, %v957_v46  ;;  %v1071_v62 = vpop.permute.xlu1 %1070  ;;  %v1110_v34 = vmul.f32 %v1101_v23, %v1088_v37 }
 0x15f   : > { %v1111_v18 = vmul.f32 %v1105_v1, %v1092_v47 }
 0x160   : > { %v988_v15 = vadd.f32 %v980_v11, %v910_v53  ;;  %v989_v0 = vadd.f32 %v981_v59, %v911_v56  ;;  %v1134_v44 = vmul.f32 %v3270_v30, %v1110_v34  ;;  %v1075_v11 = vpop.permute.xlu0 %1074 }
 0x161   : > { %v1135_v2 = vmul.f32 %v3270_v30, %v1111_v18  ;;  %v1953_v18 = vld [vmem:[%s3189_s6 + $0x8] sm:$0xff]  }
 0x162   : > { %v1079_v49 = vpop.permute.xlu1 %1078  ;;  %v2967_v39 = vadd.f32 %v1058_v4, %v988_v15  ;;  %v2969_v55 = vadd.f32 %v1059_v12, %v989_v0  ;;  %v1142_v38 = vadd.f32 %v1134_v44, %v1064_v20  ;;  %v1958_v20 = vld [vmem:[%s3189_s6 + $0x38] sm:$0xff]  }
 0x163   : > { %v1087_v53 = vsel %vm1086_vm7, %v1071_v62, %v1079_v49  ;;  %v1091_v56 = vsel %vm1086_vm7, %v1079_v49, %v1071_v62  ;;  %v1143_v36 = vadd.f32 %v1135_v2, %v1065_v50 }
 0x164   : > { %v1108_v54 = vmul.f32 %v1101_v23, %v1087_v53  ;;  %v1109_v22 = vmul.f32 %v1105_v1, %v1091_v56  ;;  %v1083_v4 = vpop.permute.xlu0 %1082 }
 0x166   : > { %v1126_v10 = vpop.permute.xlu1 %1125  ;;  %v1132_v48 = vmul.f32 %v2877_v60, %v1108_v54  ;;  %v1133_v16 = vmul.f32 %v2877_v60, %v1109_v22 }
 0x168   : > { %v1140_v46 = vadd.f32 %v1132_v48, %v2891_v13  ;;  %v1141_v61 = vadd.f32 %v1133_v16, %v2893_v21  ;;  %v1089_v13 = vsel %vm1086_vm7, %v1075_v11, %v1083_v4  ;;  %v1093_v21 = vsel %vm1086_vm7, %v1083_v4, %v1075_v11  ;;  %v1165_v54 = vpop.permute.xlu0 %1164  ;;  %v1956_v48 = vld [vmem:[%s3189_s6 + $0x30] sm:$0xff]   ;;  %v1957_v16 = vld [vmem:[%s3189_s6 + $0x18] sm:$0xff]  }
 0x169   : > { %v1112_v14 = vmul.f32 %v1101_v23, %v1089_v13  ;;  %v1113_v52 = vmul.f32 %v1105_v1, %v1093_v21 }
 0x16b   : > { %v1155_v6 = vpop.permute.xlu1 %1154  ;;  %v1136_v49 = vmul.f32 %v1126_v10, %v1112_v14  ;;  %v1137_v53 = vmul.f32 %v1126_v10, %v1113_v52 }
 0x16c   : > { %v1172_v51 = vadd.f32 %v1155_v6, %v1140_v46  ;;  %v1173_v59 = vadd.f32 %v1155_v6, %v1141_v61  ;;  %v1236_v50 = vpop.permute.xlu0 %1235 }
 0x16f   : > { %v1160_v58 = vpop.permute.xlu1 %1159 }
 0x170   : > { %v1174_v62 = vadd.f32 %v1160_v58, %v1142_v38  ;;  %v1175_v32 = vadd.f32 %v1160_v58, %v1143_v36  ;;  %v3057_v30 = vpop.permute.xlu0 %1245 }
 0x172   : > { %v1180_v60 = vpack.c.bf16 %v1174_v62, %v1172_v51  ;;  %v1181_v8 = vpack.c.bf16 %v1175_v32, %v1173_v59 }
 0x173   : > { %v999_v5 = vpop.permute.xlu1 %998 }
 0x174   : > { %1377 = vmatprep.subr.bf16.mxu0 %v1181_v8  ;;  %1877 = vmatprep.subr.bf16.mxu1 %v1181_v8  ;;  %v3059_v2 = vpop.permute.xlu0 %1255 }
 0x175   : > { %1378 = vmatpush1.bf16.msra.mxu0 %v1180_v60  ;;  %1881 = vmatpush1.bf16.msra.mxu1 %v1180_v60 }
 0x177   : > { %v1007_v12 = vpop.permute.xlu1 %1006 }
 0x178   : > { %v1012_v15 = vsel %vm1008_vm5, %v999_v5, %v1007_v12  ;;  %v1016_v0 = vsel %vm1008_vm5, %v1007_v12, %v999_v5  ;;  %v3061_v61 = vpop.permute.xlu0 %1265 }
 0x179   : > { %v1036_v31 = vmul.f32 %v2752_v35, %v1012_v15  ;;  %v1037_v29 = vmul.f32 %v2798_v27, %v1016_v0  ;;  %v1144_v35 = vadd.f32 %v1136_v49, %v2967_v39  ;;  %v1145_v27 = vadd.f32 %v1137_v53, %v2969_v55  ;;  %v1951_v55 = vld [vmem:[%s3189_s6] sm:$0xff]  }
 0x17b   : > { %v1077_v17 = vpop.permute.xlu1 %1076  ;;  %v1060_v56 = vmul.f32 %v2929_v42, %v1036_v31  ;;  %v1061_v3 = vmul.f32 %v2929_v42, %v1037_v29  ;;  %v1176_v43 = vadd.f32 %v1165_v54, %v1144_v35  ;;  %v1177_v10 = vadd.f32 %v1165_v54, %v1145_v27 }
 0x17c   : > { %v3065_v36 = vpop.permute.xlu0 %1295 }
 0x17d   : > { %v1068_v40 = vadd.f32 %v1060_v56, %v2925_v25  ;;  %v1069_v42 = vadd.f32 %v1061_v3, %v2927_v33  ;;  %v1952_v25 = vld [vmem:[%s3189_s6 + $0x20] sm:$0xff]   ;;  %v3272_v33 = vmov 0  }
 0x17f   : > { %v1085_v24 = vpop.permute.xlu1 %1084 }
 0x180   : > { %v1090_v28 = vsel %vm1086_vm7, %v1077_v17, %v1085_v24  ;;  %v1094_v41 = vsel %vm1086_vm7, %v1085_v24, %v1077_v17  ;;  %v3069_v11 = vpop.permute.xlu0 %1305 }
 0x181   : > { %v1114_v37 = vmul.f32 %v1101_v23, %v1090_v28  ;;  %v1115_v47 = vmul.f32 %v1105_v1, %v1094_v41 }
 0x183   : > { %v1138_v45 = vmul.f32 %v3271_v26, %v1114_v37  ;;  %v1139_v7 = vmul.f32 %v3271_v26, %v1115_v47  ;;  %v1170_v22 = vpop.permute.xlu1 %1169 }
 0x184   : > { %v1276_v0 = vpop.permute.xlu0 %1275 }
 0x185   : > { %v1146_v63 = vadd.f32 %v1138_v45, %v1068_v40  ;;  %v1147_v9 = vadd.f32 %v1139_v7, %v1069_v42 }
 0x187   : > { %v1178_v23 = vadd.f32 %v1170_v22, %v1146_v63  ;;  %v1179_v1 = vadd.f32 %v1170_v22, %v1147_v9  ;;  %v1231_v6 = vpop.permute.xlu1 %1230 }
 0x189   : > { %v1182_v34 = vpack.c.bf16 %v1178_v23, %v1176_v43  ;;  %v1183_v39 = vpack.c.bf16 %v1179_v1, %v1177_v10 }
 0x18b   : > { %1379 = vmatprep.subr.bf16.mxu0 %v1183_v39  ;;  %1878 = vmatprep.subr.bf16.mxu1 %v1183_v39  ;;  %v1241_v44 = vpop.permute.xlu1 %1240 }
 0x18c   : > { %1380 = vmatpush1.bf16.msra.mxu0 %v1182_v34  ;;  %1882 = vmatpush1.bf16.msra.mxu1 %v1182_v34 }
 0x18f   : > { %1860 = vmatmul.mubr.msk.bf16.vlgmr.msra.gmra.mrb[0].mxu0 %vm1348_vm8, %v1951_v55  ;;  %1864 = vmatmul.mubr.msk.bf16.vlgmr.msra.gmra.mrb[0].mxu1 %vm1348_vm8, %v1952_v25  ;;  %v1251_v46 = vpop.permute.xlu1 %1250 }
 0x190   : > { %1415 = vmatprep.mubr.bf16.mxu0 %v3272_v33  ;;  %1455 = vmatprep.mubr.bf16.mxu1 %v3272_v33 }
 0x193   : > { %v3063_v38 = vpop.permute.xlu1 %1260 }
 0x197   : > { %1861 = vmatmul.mubr.msk.bf16.gmra.mrb[4].mxu0 %vm1348_vm8, %v1953_v18  ;;  %1865 = vmatmul.mubr.msk.bf16.gmra.mrb[4].mxu1 %vm1348_vm8, %v1954_v57  ;;  %v3067_v58 = vpop.permute.xlu1 %1290 }
 0x198   : > { %1425 = vmatprep.mubr.bf16.mxu0 %v3272_v33  ;;  %1465 = vmatprep.mubr.bf16.mxu1 %v3272_v33 }
 0x19b   : > { %v3071_v51 = vpop.permute.xlu1 %1300 }
 0x19f   : > { %1862 = vmatmul.mubr.msk.bf16.gmra.mrb[8].mxu0 %vm1348_vm8, %v1955_v19  ;;  %1866 = vmatmul.mubr.msk.bf16.gmra.mrb[8].mxu1 %vm1348_vm8, %v1956_v48  ;;  %v1271_v12 = vpop.permute.xlu1 %1270 }
 0x1a0   : > { %1435 = vmatprep.mubr.bf16.mxu0 %v3272_v33  ;;  %1475 = vmatprep.mubr.bf16.mxu1 %v3272_v33 }
 0x1a3   : > { %v3079_v63 = vpop.permute.xlu1 %1280 }
 0x1a7   : > { %1863 = vmatmul.mubr.msk.bf16.gmra.mrb[12].mxu0 %vm1348_vm8, %v1957_v16  ;;  %1867 = vmatmul.mubr.msk.bf16.gmra.mrb[12].mxu1 %vm1348_vm8, %v1958_v20 }
 0x262   : > { %v1407_v59 = vpop.f32.mrb[0].mxu0  ;;  %v1447_v62 = vpop.f32.mrb[0].mxu1 }
 0x263   : > { %v1409_v32 = vpop.f32.mrb[1].mxu0  ;;  %v1449_v60 = vpop.f32.mrb[1].mxu1  ;;  %v1408_v21 = vadd.f32 %v1407_v59, %v1231_v6  ;;  %v1448_v15 = vadd.f32 %v1447_v62, %v1271_v12 }
 0x264   : > { %v1411_v8 = vpop.f32.mrb[2].mxu0  ;;  %v1451_v5 = vpop.f32.mrb[2].mxu1  ;;  %v1410_v14 = vadd.f32 %v1409_v32, %v1231_v6  ;;  %v1450_v31 = vadd.f32 %v1449_v60, %v1271_v12 }
 0x265   : > { %v1413_v4 = vpop.f32.mrb[3].mxu0  ;;  %v1453_v13 = vpop.f32.mrb[3].mxu1  ;;  %v1486_v52 = vmul.f32 0.5, %v1408_v21  ;;  %v1412_v49 = vadd.f32 %v1411_v8, %v1236_v50  ;;  %v1550_v3 = vmul.f32 0.5, %v1448_v15  ;;  %v1452_v24 = vadd.f32 %v1451_v5, %v1276_v0 }
 0x266   : > { %v1487_v37 = vmul.f32 0.5, %v1410_v14  ;;  %v1414_v47 = vadd.f32 %v1413_v4, %v1236_v50  ;;  %v1551_v26 = vmul.f32 0.5, %v1450_v31  ;;  %v1454_v45 = vadd.f32 %v1453_v13, %v1276_v0 }
 0x267   : > { %1959 = vtanh.f32 %v1486_v52  ;;  %v1488_v7 = vmul.f32 0.5, %v1412_v49  ;;  %v1552_v40 = vmul.f32 0.5, %v1452_v24 }
 0x268   : > { %1961 = vtanh.f32 %v1550_v3  ;;  %v1489_v9 = vmul.f32 0.5, %v1414_v47  ;;  %v1553_v54 = vmul.f32 0.5, %v1454_v45  ;;  %v443_v45 = vld [vmem:[%s3097_s27] sm:$0xff] }
 0x269   : > { %1963 = vtanh.f32 %v1487_v37 }
 0x26a   : > { %v1417_v29 = vpop.f32.mrb[4].mxu0  ;;  %v1457_v17 = vpop.f32.mrb[4].mxu1  ;;  %1965 = vtanh.f32 %v1551_v26 }
 0x26b   : > { %v1419_v53 = vpop.f32.mrb[5].mxu0  ;;  %v3073_v56 = vpop.f32.mrb[5].mxu1  ;;  %v1418_v42 = vadd.f32 %v1417_v29, %v1241_v44  ;;  %v1458_v22 = vadd.f32 %v1457_v17, %v3079_v63  ;;  %1967 = vtanh.f32 %v1488_v7 }
 0x26c   : > { %v1421_v28 = vpop.f32.mrb[6].mxu0  ;;  %v3075_v41 = vpop.f32.mrb[6].mxu1  ;;  %1969 = vtanh.f32 %v1552_v40  ;;  %v1420_v55 = vadd.f32 %v1419_v53, %v1241_v44 }
 0x26d   : > { %v1423_v35 = vpop.f32.mrb[7].mxu0  ;;  %v3077_v27 = vpop.f32.mrb[7].mxu1  ;;  %v1490_v39 = vmul.f32 0.5, %v1418_v42  ;;  %1971 = vtanh.f32 %v1489_v9  ;;  %v1554_v16 = vmul.f32 0.5, %v1458_v22  ;;  %v1422_v20 = vadd.f32 %v1421_v28, %v3057_v30 }
 0x26e   : > { %1973 = vtanh.f32 %v1553_v54  ;;  %v1491_v62 = vmul.f32 0.5, %v1420_v55  ;;  %v1424_v44 = vadd.f32 %v1423_v35, %v3057_v30  ;;  %v1286_v26 = vpop.permute.xlu0 %1285  ;;  %v1460_v42 = vadd.f32 %v3073_v56, %v3079_v63 }
 0x26f   : > { %v1492_v21 = vmul.f32 0.5, %v1422_v20  ;;  %v1462_v9 = vadd.f32 %v3075_v41, %v1286_v26  ;;  %v1464_v22 = vadd.f32 %v3077_v27, %v1286_v26 }
 0x270   : > { %v1493_v30 = vmul.f32 0.5, %v1424_v44  ;;  %v446_v44 = vld [vmem:[%s3097_s27 + $0x18] sm:$0xff] }
 0x271   : > { %v1960_v59 = vpop.eup %1959  ;;  %v1557_v26 = vmul.f32 0.5, %v1464_v22 }
 0x272   : > { %v1427_v43 = vpop.f32.mrb[8].mxu0  ;;  %v1467_v10 = vpop.f32.mrb[8].mxu1  ;;  %v1502_v13 = vmul.f32 0.5, %v1960_v59 }
 0x273   : > { %v1428_v23 = vadd.f32 %v1427_v43, %v1251_v46  ;;  %v1429_v1 = vpop.f32.mrb[9].mxu0  ;;  %v1469_v34 = vpop.f32.mrb[9].mxu1  ;;  %v1468_v50 = vadd.f32 %v1467_v10, %v3067_v58 }
 0x274   : > { %v1430_v25 = vadd.f32 %v1429_v1, %v1251_v46  ;;  %v1431_v33 = vpop.f32.mrb[10].mxu0  ;;  %v1471_v18 = vpop.f32.mrb[10].mxu1  ;;  %v1470_v46 = vadd.f32 %v1469_v34, %v3067_v58  ;;  %v1510_v28 = vadd.f32 0.5, %v1502_v13  ;;  %v3132_v13 = vld [vmem:[%s3097_s27 + $0x28] sm:$0xff] }
 0x275   : > { %v1518_v57 = vmul.f32 0.5, %v1428_v23  ;;  %v1433_v19 = vpop.f32.mrb[11].mxu0  ;;  %v1473_v48 = vpop.f32.mrb[11].mxu1  ;;  %v1432_v60 = vadd.f32 %v1431_v33, %v3059_v2  ;;  %v1472_v3 = vadd.f32 %v1471_v18, %v3065_v36 }
 0x276   : > { %v1519_v6 = vmul.f32 0.5, %v1430_v25  ;;  %v3086_v32 = vpop.eup %1961  ;;  %v1434_v29 = vadd.f32 %v1433_v19, %v3059_v2  ;;  %v1474_v2 = vadd.f32 %v1473_v48, %v3065_v36  ;;  %v1598_v1 = vmul.f32 %v1510_v28, %v443_v45  ;;  %v444_v25 = vld [vmem:[%s3097_s27 + $0x8] sm:$0xff] }
 0x277   : > { %1975 = vtanh.f32 %v1518_v57  ;;  %v1964_v4 = vpop.eup %1963  ;;  %v1520_v14 = vmul.f32 0.5, %v1432_v60 }
 0x278   : > { %1977 = vtanh.f32 %v1490_v39  ;;  %v3089_v0 = vpop.eup %1965  ;;  %v1503_v37 = vmul.f32 0.5, %v1964_v4  ;;  %v1521_v47 = vmul.f32 0.5, %v1434_v29 }
 0x279   : > { %1979 = vtanh.f32 %v1519_v6  ;;  %v1968_v31 = vpop.eup %1967 }
 0x27a   : > { %1981 = vtanh.f32 %v1554_v16  ;;  %v1437_v8 = vpop.f32.mrb[12].mxu0  ;;  %v1477_v5 = vpop.f32.mrb[12].mxu1  ;;  %v1511_v36 = vadd.f32 0.5, %v1503_v37  ;;  %v1504_v33 = vmul.f32 0.5, %v1968_v31  ;;  %v1556_v31 = vmul.f32 0.5, %v1462_v9 }
 0x27b   : > { %1983 = vtanh.f32 %v1468_v50  ;;  %v1439_v12 = vpop.f32.mrb[13].mxu0  ;;  %v1479_v15 = vpop.f32.mrb[13].mxu1  ;;  %v1438_v7 = vadd.f32 %v1437_v8, %v3063_v38  ;;  %v1478_v10 = vadd.f32 %v1477_v5, %v3071_v51  ;;  %v1567_v9 = vmul.f32 0.5, %v3089_v0 }
 0x27c   : > { %1985 = vtanh.f32 %v1491_v62  ;;  %v1441_v58 = vpop.f32.mrb[14].mxu0  ;;  %v3091_v52 = vpop.f32.mrb[14].mxu1  ;;  %v1440_v39 = vadd.f32 %v1439_v12, %v3063_v38  ;;  %v1480_v63 = vadd.f32 %v1479_v15, %v3071_v51  ;;  %v1599_v51 = vmul.f32 %v1511_v36, %v444_v25  ;;  %v445_v62 = vld [vmem:[%s3097_s27 + $0x10] sm:$0xff]  ;;  %v3138_v12 = vld [vmem:[%s3097_s27 + $0x38] sm:$0xff] }
 0x27d   : > { %1987 = vtanh.f32 %v1470_v46  ;;  %v1443_v17 = vpop.f32.mrb[15].mxu0  ;;  %v3100_v49 = vpop.f32.mrb[15].mxu1  ;;  %v1522_v34 = vmul.f32 0.5, %v1438_v7  ;;  %v1442_v57 = vadd.f32 %v1441_v58, %v3061_v61  ;;  %v447_v46 = vld [vmem:[%s3097_s27 + $0x20] sm:$0xff]  ;;  %v1512_v4 = vadd.f32 0.5, %v1504_v33 }
 0x27e   : > { %v3102_v53 = vpop.eup %1969  ;;  %1989 = vtanh.f32 %v1520_v14  ;;  %v1523_v18 = vmul.f32 0.5, %v1440_v39  ;;  %v1444_v16 = vadd.f32 %v1443_v17, %v3061_v61  ;;  %v1555_v58 = vmul.f32 0.5, %v1460_v42 }
 0x27f   : > { %v1972_v24 = vpop.eup %1971  ;;  %1991 = vtanh.f32 %v1492_v21  ;;  %v1524_v6 = vmul.f32 0.5, %v1442_v57  ;;  %v3135_v21 = vld [vmem:[%s3097_s27 + $0x30] sm:$0xff]  ;;  %v1484_v28 = vadd.f32 %v3100_v49, %v3069_v11  ;;  %v1600_v45 = vmul.f32 %v1512_v4, %v445_v62 }
 0x280   : > { %v3105_v35 = vpop.eup %1973  ;;  %1993 = vtanh.f32 %v1493_v30  ;;  %v1505_v50 = vmul.f32 0.5, %v1972_v24  ;;  %v1525_v8 = vmul.f32 0.5, %v1444_v16  ;;  %v1482_v30 = vadd.f32 %v3091_v52, %v3069_v11 }
 0x281   : > { %v1976_v40 = vpop.eup %1975  ;;  %1995 = vtanh.f32 %v1521_v47  ;;  %v1566_v42 = vmul.f32 0.5, %v3086_v32  ;;  %v1575_v33 = vadd.f32 0.5, %v1567_v9 }
 0x282   : > { %v1978_v54 = vpop.eup %1977  ;;  %v1534_v43 = vmul.f32 0.5, %v1976_v40  ;;  %1997 = vtanh.f32 %v1472_v3  ;;  %v1513_v47 = vadd.f32 0.5, %v1505_v50 }
 0x283   : > { %v1980_v23 = vpop.eup %1979  ;;  %1999 = vtanh.f32 %v1474_v2  ;;  %v1506_v3 = vmul.f32 0.5, %v1978_v54  ;;  %v1574_v0 = vadd.f32 0.5, %v1566_v42 }
 0x284   : > { %v3116_v55 = vpop.eup %1981  ;;  %v1542_v56 = vadd.f32 0.5, %v1534_v43  ;;  %v1535_v41 = vmul.f32 0.5, %v1980_v23  ;;  %2001 = vtanh.f32 %v1522_v34  ;;  %v1601_v23 = vmul.f32 %v1513_v47, %v446_v44 }
 0x285   : > { %v1984_v27 = vpop.eup %1983  ;;  %2003 = vtanh.f32 %v1478_v10  ;;  %v1514_v11 = vadd.f32 0.5, %v1506_v3 }
 0x286   : > { %v1986_v19 = vpop.eup %1985  ;;  %v1606_v38 = vmul.f32 %v1984_v27, %v1542_v56  ;;  %v1543_v48 = vadd.f32 0.5, %v1535_v41  ;;  %2005 = vtanh.f32 %v1523_v18 }
 0x287   : > { %v1988_v20 = vpop.eup %1987  ;;  %2007 = vtanh.f32 %v1480_v63  ;;  %v1507_v2 = vmul.f32 0.5, %v1986_v19  ;;  %v1602_v18 = vmul.f32 %v1514_v11, %v447_v46 }
 0x288   : > { %v1990_v59 = vpop.eup %1989  ;;  %v1614_v60 = vadd.f32 %v1606_v38, %v1598_v1  ;;  %v1607_v61 = vmul.f32 %v1988_v20, %v1543_v48  ;;  %2009 = vtanh.f32 %v1524_v6 }
 0x289   : > { %v1992_v5 = vpop.eup %1991  ;;  %v1536_v15 = vmul.f32 0.5, %v1990_v59  ;;  %v1515_v39 = vadd.f32 0.5, %v1507_v2 }
 0x28a   : > { %v1994_v14 = vpop.eup %1993  ;;  %2011 = vtanh.f32 %v1614_v60  ;;  %1673 = vst [vmem:[%s3126_s15] sm:$0xff] %v1614_v60  ;;  %v1615_v29 = vadd.f32 %v1607_v61, %v1599_v51  ;;  %v1508_v49 = vmul.f32 0.5, %v1992_v5  ;;  %v1568_v51 = vmul.f32 0.5, %v3102_v53 }
 0x28b   : > { %v1996_v17 = vpop.eup %1995  ;;  %v1544_v24 = vadd.f32 0.5, %v1536_v15  ;;  %2013 = vtanh.f32 %v1525_v8  ;;  %v1509_v25 = vmul.f32 0.5, %v1994_v14  ;;  %v1603_v50 = vmul.f32 %v1515_v39, %v3132_v13 }
 0x28c   : > { %v1998_v37 = vpop.eup %1997  ;;  %2015 = vtanh.f32 %v1615_v29  ;;  %1674 = vst [vmem:[%s3126_s15 + $0x8] sm:$0xff] %v1615_v29  ;;  %v1537_v52 = vmul.f32 0.5, %v1996_v17  ;;  %v1516_v57 = vadd.f32 0.5, %v1508_v49 }
 0x28d   : > { %v1608_v7 = vmul.f32 %v1998_v37, %v1544_v24  ;;  %2017 = vtanh.f32 %v1482_v30  ;;  %v2000_v40 = vpop.eup %1999  ;;  %v1517_v6 = vadd.f32 0.5, %v1509_v25 }
 0x28e   : > { %2019 = vtanh.f32 %v1555_v58  ;;  %v1545_v54 = vadd.f32 0.5, %v1537_v52  ;;  %v2002_v43 = vpop.eup %2001  ;;  %v1604_v5 = vmul.f32 %v1516_v57, %v3135_v21  ;;  %v1576_v58 = vadd.f32 0.5, %v1568_v51 }
 0x28f   : > { %v1616_v10 = vadd.f32 %v1608_v7, %v1600_v45  ;;  %2021 = vtanh.f32 %v1484_v28  ;;  %v2004_v22 = vpop.eup %2003  ;;  %v1538_v36 = vmul.f32 0.5, %v2002_v43  ;;  %v1605_v17 = vmul.f32 %v1517_v6, %v3138_v12 }
 0x290   : > { %2023 = vtanh.f32 %v1556_v31  ;;  %v1609_v1 = vmul.f32 %v2000_v40, %v1545_v54  ;;  %v2006_v34 = vpop.eup %2005  ;;  %v1569_v31 = vmul.f32 0.5, %v3105_v35  ;;  %v1570_v35 = vmul.f32 0.5, %v3116_v55 }
 0x291   : > { %2025 = vtanh.f32 %v1616_v10  ;;  %1675 = vst [vmem:[%s3126_s15 + $0x10] sm:$0xff] %v1616_v10  ;;  %v2008_v32 = vpop.eup %2007  ;;  %v1546_v41 = vadd.f32 0.5, %v1538_v36  ;;  %v1539_v63 = vmul.f32 0.5, %v2006_v34 }
 0x292   : > { %v1617_v56 = vadd.f32 %v1609_v1, %v1601_v23  ;;  %v2010_v27 = vpop.eup %2009  ;;  %2027 = vtanh.f32 %v1557_v26  ;;  %v1577_v26 = vadd.f32 0.5, %v1569_v31  ;;  %v1578_v2 = vadd.f32 0.5, %v1570_v35 }
 0x293   : > { %v1610_v38 = vmul.f32 %v2004_v22, %v1546_v41  ;;  %v1547_v48 = vadd.f32 0.5, %v1539_v63  ;;  %v1540_v16 = vmul.f32 0.5, %v2010_v27 }
 0x294   : > { %v2012_v19 = vpop.eup %2011  ;;  %2029 = vtanh.f32 %v1617_v56  ;;  %1676 = vst [vmem:[%s3126_s15 + $0x18] sm:$0xff] %v1617_v56 }
 0x295   : > { %v2014_v20 = vpop.eup %2013  ;;  %v1630_v59 = vmul.f32 %v2012_v19, %v1574_v0  ;;  %v1618_v44 = vadd.f32 %v1610_v38, %v1602_v18  ;;  %v1611_v46 = vmul.f32 %v2008_v32, %v1547_v48  ;;  %v1548_v60 = vadd.f32 0.5, %v1540_v16 }
 0x296   : > { %v2016_v62 = vpop.eup %2015  ;;  %v1541_v61 = vmul.f32 0.5, %v2014_v20 }
 0x297   : > { %v2018_v8 = vpop.eup %2017  ;;  %1654 = vst [vmem:[%s3153_s19] sm:$0xff] %v1630_v59  ;;  %v1631_v4 = vmul.f32 %v2016_v62, %v1575_v33  ;;  %2031 = vtanh.f32 %v1618_v44  ;;  %1677 = vst [vmem:[%s3126_s15 + $0x20] sm:$0xff] %v1618_v44  ;;  %v1619_v53 = vadd.f32 %v1611_v46, %v1603_v50 }
 0x298   : > { %v2020_v15 = vpop.eup %2019  ;;  %v1612_v13 = vmul.f32 %v2018_v8, %v1548_v60  ;;  %v1549_v30 = vadd.f32 0.5, %v1541_v61 }
 0x299   : > { %v2022_v14 = vpop.eup %2021  ;;  %1655 = vst [vmem:[%s3153_s19 + $0x8] sm:$0xff] %v1631_v4  ;;  %2033 = vtanh.f32 %v1619_v53  ;;  %1678 = vst [vmem:[%s3126_s15 + $0x28] sm:$0xff] %v1619_v53  ;;  %v1571_v12 = vmul.f32 0.5, %v2020_v15 }
 0x29a   : > { %v2024_v29 = vpop.eup %2023  ;;  %v1620_v21 = vadd.f32 %v1612_v13, %v1604_v5  ;;  %v1613_v3 = vmul.f32 %v2022_v14, %v1549_v30 }
 0x29b   : > { %v2026_v24 = vpop.eup %2025  ;;  %v1572_v7 = vmul.f32 0.5, %v2024_v29  ;;  %v1579_v42 = vadd.f32 0.5, %v1571_v12 }
 0x29c   : > { %v1632_v28 = vmul.f32 %v2026_v24, %v1576_v58  ;;  %2035 = vtanh.f32 %v1620_v21  ;;  %1679 = vst [vmem:[%s3126_s15 + $0x30] sm:$0xff] %v1620_v21  ;;  %v1621_v37 = vadd.f32 %v1613_v3, %v1605_v17  ;;  %v2028_v47 = vpop.eup %2027 }
 0x29d   : > { %v1573_v9 = vmul.f32 0.5, %v2028_v47  ;;  %v1580_v11 = vadd.f32 0.5, %v1572_v7 }
 0x29e   : > { %v2030_v52 = vpop.eup %2029  ;;  %1656 = vst [vmem:[%s3153_s19 + $0x10] sm:$0xff] %v1632_v28  ;;  %2037 = vtanh.f32 %v1621_v37  ;;  %1680 = vst [vmem:[%s3126_s15 + $0x38] sm:$0xff] %v1621_v37 }
 0x29f   : > { %v1633_v45 = vmul.f32 %v2030_v52, %v1577_v26  ;;  %v1581_v10 = vadd.f32 0.5, %v1573_v9 }
 0x2a1   : > { %1657 = vst [vmem:[%s3153_s19 + $0x18] sm:$0xff] %v1633_v45  ;;  %v2032_v40 = vpop.eup %2031 }
 0x2a2   : > { %v1634_v54 = vmul.f32 %v2032_v40, %v1578_v2 }
 0x2a3   : > { %v2034_v43 = vpop.eup %2033 }
 0x2a4   : > { %1658 = vst [vmem:[%s3153_s19 + $0x20] sm:$0xff] %v1634_v54  ;;  %v1635_v55 = vmul.f32 %v2034_v43, %v1579_v42 }
 0x2a6   : > { %v2036_v49 = vpop.eup %2035  ;;  %1659 = vst [vmem:[%s3153_s19 + $0x28] sm:$0xff] %v1635_v55 }
 0x2a7   : > { %v1636_v22 = vmul.f32 %v2036_v49, %v1580_v11 }
 0x2a8   : > { %v2038_v23 = vpop.eup %2037 }
 0x2a9   : > { %1660 = vst [vmem:[%s3153_s19 + $0x30] sm:$0xff] %v1636_v22  ;;  %v1637_v1 = vmul.f32 %v2038_v23, %v1581_v10 }
 0x2ab   : > { %1661 = vst [vmem:[%s3153_s19 + $0x38] sm:$0xff] %v1637_v1 }
 0x2ac PF: > { %s20_s11 = sadd.s32 1, %s2061_s11   ;;  %s3273_s30 = smov %s2057_s10 }
 0x2ad   : > { %p17_p5 = scmp.ge.s32.totalorder %s20_s11, 4   ;;  %s3274_s10 = smov %s3276_s12 }
 0x2af   :  { %19 = sbr.rel (!%p17_p5) target bundleno = 2 (0x2), region = 115 }

</bundles_post_ra>
